<compile_context>
chip_gen: v7x
topology: tpu7x:2x2x1
jax: 0.10.0
libtpu: 0.0.40
codegen_flags: <defaults>
</compile_context>

<pallas_src>
import jax
import jax.numpy as jnp
from jax import lax
from jax.experimental import pallas as pl
from jax.experimental.pallas import tpu as pltpu


def _round_up(x, m):
    return ((x + m - 1) // m) * m


def _pad_gate_cols(w, H, Hp):
    """(..., 9*H) -> (..., 9*Hp): zero-pad each gate's columns to Hp lanes."""
    lead = w.shape[:-1]
    w = w.reshape(*lead, 9, H)
    w = jnp.pad(w, [(0, 0)] * len(lead) + [(0, 0), (0, Hp - H)])
    return w.reshape(*lead, 9 * Hp)


def _dual_lstm_kernel(xp_ref, wh_ref, vw_ref, vb_ref,
                      c1_out, c2_out, h_out, y_out):
    nt = pl.program_id(1)                 # time-block index (innermost axis)
    Hp = h_out.shape[-1]                  # lane-padded hidden size
    ts = xp_ref.shape[0]                  # timesteps in this block (static)

    # Reset state at the start of each batch tile's time sweep. The output
    # blocks have a constant index along the time axis, so they stay
    # VMEM-resident and act as the recurrent-state accumulators.
    @pl.when(nt == 0)
    def _():
        h_out[...] = jnp.zeros_like(h_out)
        c1_out[...] = jnp.zeros_like(c1_out)
        c2_out[...] = jnp.zeros_like(c2_out)

    wh = wh_ref[...]                      # (Hp, 9*Hp) bf16, resident

    def step(s, carry):
        h, c1, c2 = carry
        # Serial critical path: one (B, Hp) @ (Hp, 9*Hp) bf16 MXU dot per step,
        # f32 accumulation; the x-projection part was precomputed outside.
        gates = xp_ref[s] + jnp.dot(h.astype(jnp.bfloat16), wh,
                                    preferred_element_type=jnp.float32)
        # Consume the gate slab gate-by-gate (short vreg live ranges). All
        # slices are 128-lane aligned because each gate starts at k*Hp.
        c1 = (jax.nn.sigmoid(gates[:, 0 * Hp:1 * Hp]) * c1
              + jax.nn.sigmoid(gates[:, 1 * Hp:2 * Hp])
              * jnp.tanh(gates[:, 2 * Hp:3 * Hp]))
        h1 = jax.nn.sigmoid(gates[:, 3 * Hp:4 * Hp]) * jnp.tanh(c1)
        c2 = (jax.nn.sigmoid(gates[:, 4 * Hp:5 * Hp]) * c2
              + jax.nn.sigmoid(gates[:, 5 * Hp:6 * Hp])
              * jnp.tanh(gates[:, 6 * Hp:7 * Hp]))
        h2 = jax.nn.sigmoid(gates[:, 7 * Hp:8 * Hp]) * jnp.tanh(c2)
        g = jax.nn.sigmoid(gates[:, 8 * Hp:9 * Hp])
        h = g * h1 + (1.0 - g) * h2
        return (h, c1, c2)

    h, c1, c2 = lax.fori_loop(
        0, ts, step, (h_out[...], c1_out[...], c2_out[...]), unroll=True)

    h_out[...] = h
    c1_out[...] = c1
    c2_out[...] = c2

    # Output projection only once, on the last time block.
    @pl.when(nt == pl.num_programs(1) - 1)
    def _():
        y_out[...] = (jnp.dot(h.astype(jnp.bfloat16), vw_ref[...],
                              preferred_element_type=jnp.float32)
                      + vb_ref[...])


def dual_memory_cell_lstm(inputs, params, *, time_block=None, batch_block=None):
    """inputs: (B, T, I) float32.  Returns ((c1, c2), h, y_last)."""
    B, T, I = inputs.shape
    wx, wh, b, vw, vb = (params["wx"], params["wh"], params["b"],
                         params["vw"], params["vb"])
    H = wh.shape[0]
    O = vw.shape[1]
    Hp = _round_up(H, 128)                # lane-aligned hidden size
    Op = _round_up(O, 128)                # lane-aligned output size

    if time_block is None:
        time_block = T
    assert T % time_block == 0, "time_block must divide T"
    if batch_block is None:
        batch_block = B                   # >1 batch tiles: use multiples of 8
    assert B % batch_block == 0, "batch_block must divide B"
    num_bt = B // batch_block
    num_tt = T // time_block

    # --- pack / pad parameters (padded gate lanes carry exact zeros, so the
    # padded state lanes stay 0 through the whole recurrence) ---------------
    wx_p = _pad_gate_cols(wx, H, Hp).astype(jnp.float32)             # (I, 9Hp)
    wh_p = _pad_gate_cols(wh, H, Hp)                                 # (H, 9Hp)
    wh_p = jnp.pad(wh_p, ((0, Hp - H), (0, 0))).astype(jnp.bfloat16)  # (Hp,9Hp)
    b_p = _pad_gate_cols(b.reshape(1, 9 * H), H, Hp).astype(jnp.float32)
    vw_p = jnp.pad(vw, ((0, Hp - H), (0, Op - O))).astype(jnp.bfloat16)
    vb_p = jnp.pad(vb, (0, Op - O)).reshape(1, Op).astype(jnp.float32)

    # --- hoisted input projection: one big MXU-friendly matmul -------------
    x_tbi = jnp.transpose(inputs, (1, 0, 2)).astype(jnp.float32)     # (T, B, I)
    xproj = (x_tbi.reshape(T * B, I) @ wx_p + b_p).reshape(T, B, 9 * Hp)

    out_shapes = (
        jax.ShapeDtypeStruct((B, Hp), jnp.float32),   # c1
        jax.ShapeDtypeStruct((B, Hp), jnp.float32),   # c2
        jax.ShapeDtypeStruct((B, Hp), jnp.float32),   # h
        jax.ShapeDtypeStruct((B, Op), jnp.float32),   # y (last step)
    )
    const = lambda nb, nt: (0, 0)

    c1, c2, h, y = pl.pallas_call(
        _dual_lstm_kernel,
        out_shape=out_shapes,
        grid_spec=pltpu.PrefetchScalarGridSpec(
            num_scalar_prefetch=0,
            grid=(num_bt, num_tt),                     # time innermost
            in_specs=[
                pl.BlockSpec((time_block, batch_block, 9 * Hp),
                             lambda nb, nt: (nt, nb, 0)),            # xproj
                pl.BlockSpec((Hp, 9 * Hp), const),                   # Wh (bf16)
                pl.BlockSpec((Hp, Op), const),                       # V  (bf16)
                pl.BlockSpec((1, Op), const),                        # V bias
            ],
            out_specs=[
                pl.BlockSpec((batch_block, Hp), lambda nb, nt: (nb, 0)),
                pl.BlockSpec((batch_block, Hp), lambda nb, nt: (nb, 0)),
                pl.BlockSpec((batch_block, Hp), lambda nb, nt: (nb, 0)),
                pl.BlockSpec((batch_block, Op), lambda nb, nt: (nb, 0)),
            ],
        ),
        compiler_params=pltpu.CompilerParams(
            # batch tiles may shard across TensorCores; time is serial.
            dimension_semantics=("parallel", "arbitrary"),
            # explicit scoped-VMEM budget (raises v5e's 16 MiB default, leaves
            # headroom on v7x's 64 MiB physical VMEM).
            vmem_limit_bytes=48 * 1024 * 1024,
        ),
    )(xproj, wh_p, vw_p, vb_p)

    # strip lane padding
    return (c1[:, :H], c2[:, :H]), h[:, :H], y[:, :O]


def init_params(key, input_size, hidden_size, output_size):
    """Deterministic synthetic parameters (9 gate Linears fused + output Linear)."""
    ks = jax.random.split(key, 4)
    H, I, O = hidden_size, input_size, output_size
    scale = 1.0 / jnp.sqrt(jnp.float32(I + H))
    # Fused gate weights: combined (I+H) -> 9H, split into x part and h part.
    w_full = jax.random.uniform(ks[0], (I + H, 9 * H), jnp.float32, -scale, scale)
    b = jax.random.uniform(ks[1], (9 * H,), jnp.float32, -scale, scale)
    vscale = 1.0 / jnp.sqrt(jnp.float32(H))
    vw = jax.random.uniform(ks[2], (H, O), jnp.float32, -vscale, vscale)
    vb = jax.random.uniform(ks[3], (O,), jnp.float32, -vscale, vscale)
    return {"wx": w_full[:I], "wh": w_full[I:], "b": b, "vw": vw, "vb": vb}


def reference_forward(inputs, params):
    """Pure-JAX f32 reference mirroring the PyTorch loop (for validation)."""
    B, T, I = inputs.shape
    H = params["wh"].shape[0]
    wx, wh, b, vw, vb = (params["wx"], params["wh"], params["b"],
                         params["vw"], params["vb"])

    def step(carry, x_t):
        h, c1, c2 = carry
        gates = x_t @ wx + h @ wh + b
        f1 = jax.nn.sigmoid(gates[:, 0 * H:1 * H])
        i1 = jax.nn.sigmoid(gates[:, 1 * H:2 * H])
        cc1 = jnp.tanh(gates[:, 2 * H:3 * H])
        o1 = jax.nn.sigmoid(gates[:, 3 * H:4 * H])
        f2 = jax.nn.sigmoid(gates[:, 4 * H:5 * H])
        i2 = jax.nn.sigmoid(gates[:, 5 * H:6 * H])
        cc2 = jnp.tanh(gates[:, 6 * H:7 * H])
        o2 = jax.nn.sigmoid(gates[:, 7 * H:8 * H])
        g = jax.nn.sigmoid(gates[:, 8 * H:9 * H])
        c1 = f1 * c1 + i1 * cc1
        c2 = f2 * c2 + i2 * cc2
        h = g * (o1 * jnp.tanh(c1)) + (1.0 - g) * (o2 * jnp.tanh(c2))
        return (h, c1, c2), None

    init = (jnp.zeros((B, H)), jnp.zeros((B, H)), jnp.zeros((B, H)))
    (h, c1, c2), _ = jax.lax.scan(step, init, jnp.transpose(inputs, (1, 0, 2)))
    y = h @ vw + vb
    return (c1, c2), h, y


if __name__ == "__main__":
    B, T, I, H, O = 2, 8, 16, 32, 8
    key = jax.random.PRNGKey(0)
    k_in, k_par = jax.random.split(key)
    inputs = jax.random.normal(k_in, (B, T, I), dtype=jnp.float32)
    params = init_params(k_par, I, H, O)

    # time_block=4 -> two time blocks, exercising the cross-grid state carry.
    (c1, c2), h, y = jax.block_until_ready(
        dual_memory_cell_lstm(inputs, params, time_block=4))

    (rc1, rc2), rh, ry = reference_forward(inputs, params)
    # bf16 MXU operands in the kernel => relaxed tolerance vs. the f32 reference.
    tol = 3e-2
    assert jnp.allclose(c1, rc1, atol=tol), "c1 mismatch"
    assert jnp.allclose(c2, rc2, atol=tol), "c2 mismatch"
    assert jnp.allclose(h, rh, atol=tol), "h mismatch"
    assert jnp.allclose(y, ry, atol=tol), "y mismatch"

    print("KERNEL_OK")
</pallas_src>

<mosaic_0001>
module attributes {stable_mosaic.version = 11 : i64} {
  func.func @_dual_lstm_kernel(%arg0: i32, %arg1: i32, %arg2: memref<4x2x1152xf32, #tpu.memory_space<vmem>>, %arg3: memref<128x1152xbf16, #tpu.memory_space<vmem>>, %arg4: memref<128x128xbf16, #tpu.memory_space<vmem>>, %arg5: memref<1x128xf32, #tpu.memory_space<vmem>>, %arg6: memref<2x128xf32, #tpu.memory_space<vmem>>, %arg7: memref<2x128xf32, #tpu.memory_space<vmem>>, %arg8: memref<2x128xf32, #tpu.memory_space<vmem>>, %arg9: memref<2x128xf32, #tpu.memory_space<vmem>>) attributes {dimension_semantics = [#tpu.dimension_semantics<parallel>, #tpu.dimension_semantics<arbitrary>], iteration_bounds = array<i64: 1, 2>, scalar_prefetch = 0 : i64, scratch_operands = 0 : i64, tpu.core_type = #tpu.core_type<tc>, window_params = [{transform_indices = @transform_0, window_bounds = array<i64: 4, 2, 1152>}, {pipeline_mode = #tpu.pipeline_mode<synchronous>, transform_indices = @transform_1, window_bounds = array<i64: 128, 1152>}, {pipeline_mode = #tpu.pipeline_mode<synchronous>, transform_indices = @transform_2, window_bounds = array<i64: 128, 128>}, {pipeline_mode = #tpu.pipeline_mode<synchronous>, transform_indices = @transform_3, window_bounds = array<i64: 1, 128>}, {transform_indices = @transform_4, window_bounds = array<i64: 2, 128>}, {transform_indices = @transform_5, window_bounds = array<i64: 2, 128>}, {transform_indices = @transform_6, window_bounds = array<i64: 2, 128>}, {transform_indices = @transform_7, window_bounds = array<i64: 2, 128>}]} {
    %c0_i32 = arith.constant 0 : i32
    %0 = arith.cmpi eq, %arg1, %c0_i32 : i32
    %1 = arith.extui %0 : i1 to i32
    %c0_i32_0 = arith.constant 0 : i32
    %2 = arith.cmpi ne, %1, %c0_i32_0 : i32
    scf.if %2 {
      %cst_60 = arith.constant 0.000000e+00 : f32
      %281 = vector.broadcast %cst_60 : f32 to vector<2x128xf32>
      %c0_61 = arith.constant 0 : index
      %c0_62 = arith.constant 0 : index
      %282 = vector.load %arg8[%c0_61, %c0_62] : memref<2x128xf32, #tpu.memory_space<vmem>>, vector<2x128xf32>
      tpu.vector_store %arg8[%c0_61, %c0_62], %281 {strides = array<i32>} : memref<2x128xf32, #tpu.memory_space<vmem>>, vector<2x128xf32>,
      %cst_63 = arith.constant 0.000000e+00 : f32
      %283 = vector.broadcast %cst_63 : f32 to vector<2x128xf32>
      %c0_64 = arith.constant 0 : index
      %c0_65 = arith.constant 0 : index
      %284 = vector.load %arg6[%c0_64, %c0_65] : memref<2x128xf32, #tpu.memory_space<vmem>>, vector<2x128xf32>
      tpu.vector_store %arg6[%c0_64, %c0_65], %283 {strides = array<i32>} : memref<2x128xf32, #tpu.memory_space<vmem>>, vector<2x128xf32>,
      %cst_66 = arith.constant 0.000000e+00 : f32
      %285 = vector.broadcast %cst_66 : f32 to vector<2x128xf32>
      %c0_67 = arith.constant 0 : index
      %c0_68 = arith.constant 0 : index
      %286 = vector.load %arg7[%c0_67, %c0_68] : memref<2x128xf32, #tpu.memory_space<vmem>>, vector<2x128xf32>
      tpu.vector_store %arg7[%c0_67, %c0_68], %285 {strides = array<i32>} : memref<2x128xf32, #tpu.memory_space<vmem>>, vector<2x128xf32>,
    } else {
    }
    %c0 = arith.constant 0 : index
    %c0_1 = arith.constant 0 : index
    %3 = vector.load %arg3[%c0, %c0_1] : memref<128x1152xbf16, #tpu.memory_space<vmem>>, vector<128x1152xbf16>
    %c0_2 = arith.constant 0 : index
    %c0_3 = arith.constant 0 : index
    %4 = vector.load %arg8[%c0_2, %c0_3] : memref<2x128xf32, #tpu.memory_space<vmem>>, vector<2x128xf32>
    %c0_4 = arith.constant 0 : index
    %c0_5 = arith.constant 0 : index
    %5 = vector.load %arg6[%c0_4, %c0_5] : memref<2x128xf32, #tpu.memory_space<vmem>>, vector<2x128xf32>
    %c0_6 = arith.constant 0 : index
    %c0_7 = arith.constant 0 : index
    %6 = vector.load %arg7[%c0_6, %c0_7] : memref<2x128xf32, #tpu.memory_space<vmem>>, vector<2x128xf32>
    %c0_i32_8 = arith.constant 0 : i32
    %7 = arith.index_cast %c0_i32_8 : i32 to index
    %c0_9 = arith.constant 0 : index
    %c0_10 = arith.constant 0 : index
    %8 = vector.load %arg2[%7, %c0_9, %c0_10] : memref<4x2x1152xf32, #tpu.memory_space<vmem>>, vector<1x2x1152xf32>
    %9 = vector.shape_cast %8 : vector<1x2x1152xf32> to vector<2x1152xf32>
    %10 = arith.truncf %4 : vector<2x128xf32> to vector<2x128xbf16>
    %cst = arith.constant dense<0.000000e+00> : vector<2x1152xf32>
    %11 = tpu.matmul %10, %3, %cst {dimension_numbers = #tpu.dot_dimension_numbers<[1], [0], [0], [1], [0, 0, 1, 1], [], []>} : vector<2x128xbf16>, vector<128x1152xbf16>, vector<2x1152xf32> -> vector<2x1152xf32>
    %12 = arith.addf %9, %11 : vector<2x1152xf32>
    %13 = vector.extract_strided_slice %12 {offsets = [0, 0], sizes = [2, 128], strides = [1, 1]} : vector<2x1152xf32> to vector<2x128xf32>
    %14 = arith.negf %13 : vector<2x128xf32>
    %15 = math.exp %14 : vector<2x128xf32>
    %cst_11 = arith.constant 1.000000e+00 : f32
    %16 = vector.broadcast %cst_11 : f32 to vector<2x128xf32>
    %17 = arith.addf %16, %15 : vector<2x128xf32>
    %18 = arith.divf %16, %17 : vector<2x128xf32>
    %19 = arith.mulf %18, %5 : vector<2x128xf32>
    %20 = vector.extract_strided_slice %12 {offsets = [0, 128], sizes = [2, 128], strides = [1, 1]} : vector<2x1152xf32> to vector<2x128xf32>
    %21 = arith.negf %20 : vector<2x128xf32>
    %22 = math.exp %21 : vector<2x128xf32>
    %cst_12 = arith.constant 1.000000e+00 : f32
    %23 = vector.broadcast %cst_12 : f32 to vector<2x128xf32>
    %24 = arith.addf %23, %22 : vector<2x128xf32>
    %25 = arith.divf %23, %24 : vector<2x128xf32>
    %26 = vector.extract_strided_slice %12 {offsets = [0, 256], sizes = [2, 128], strides = [1, 1]} : vector<2x1152xf32> to vector<2x128xf32>
    %27 = math.tanh %26 : vector<2x128xf32>
    %28 = arith.mulf %25, %27 : vector<2x128xf32>
    %29 = arith.addf %19, %28 : vector<2x128xf32>
    %30 = vector.extract_strided_slice %12 {offsets = [0, 384], sizes = [2, 128], strides = [1, 1]} : vector<2x1152xf32> to vector<2x128xf32>
    %31 = arith.negf %30 : vector<2x128xf32>
    %32 = math.exp %31 : vector<2x128xf32>
    %cst_13 = arith.constant 1.000000e+00 : f32
    %33 = vector.broadcast %cst_13 : f32 to vector<2x128xf32>
    %34 = arith.addf %33, %32 : vector<2x128xf32>
    %35 = arith.divf %33, %34 : vector<2x128xf32>
    %36 = math.tanh %29 : vector<2x128xf32>
    %37 = arith.mulf %35, %36 : vector<2x128xf32>
    %38 = vector.extract_strided_slice %12 {offsets = [0, 512], sizes = [2, 128], strides = [1, 1]} : vector<2x1152xf32> to vector<2x128xf32>
    %39 = arith.negf %38 : vector<2x128xf32>
    %40 = math.exp %39 : vector<2x128xf32>
    %cst_14 = arith.constant 1.000000e+00 : f32
    %41 = vector.broadcast %cst_14 : f32 to vector<2x128xf32>
    %42 = arith.addf %41, %40 : vector<2x128xf32>
    %43 = arith.divf %41, %42 : vector<2x128xf32>
    %44 = arith.mulf %43, %6 : vector<2x128xf32>
    %45 = vector.extract_strided_slice %12 {offsets = [0, 640], sizes = [2, 128], strides = [1, 1]} : vector<2x1152xf32> to vector<2x128xf32>
    %46 = arith.negf %45 : vector<2x128xf32>
    %47 = math.exp %46 : vector<2x128xf32>
    %cst_15 = arith.constant 1.000000e+00 : f32
    %48 = vector.broadcast %cst_15 : f32 to vector<2x128xf32>
    %49 = arith.addf %48, %47 : vector<2x128xf32>
    %50 = arith.divf %48, %49 : vector<2x128xf32>
    %51 = vector.extract_strided_slice %12 {offsets = [0, 768], sizes = [2, 128], strides = [1, 1]} : vector<2x1152xf32> to vector<2x128xf32>
    %52 = math.tanh %51 : vector<2x128xf32>
    %53 = arith.mulf %50, %52 : vector<2x128xf32>
    %54 = arith.addf %44, %53 : vector<2x128xf32>
    %55 = vector.extract_strided_slice %12 {offsets = [0, 896], sizes = [2, 128], strides = [1, 1]} : vector<2x1152xf32> to vector<2x128xf32>
    %56 = arith.negf %55 : vector<2x128xf32>
    %57 = math.exp %56 : vector<2x128xf32>
    %cst_16 = arith.constant 1.000000e+00 : f32
    %58 = vector.broadcast %cst_16 : f32 to vector<2x128xf32>
    %59 = arith.addf %58, %57 : vector<2x128xf32>
    %60 = arith.divf %58, %59 : vector<2x128xf32>
    %61 = math.tanh %54 : vector<2x128xf32>
    %62 = arith.mulf %60, %61 : vector<2x128xf32>
    %63 = vector.extract_strided_slice %12 {offsets = [0, 1024], sizes = [2, 128], strides = [1, 1]} : vector<2x1152xf32> to vector<2x128xf32>
    %64 = arith.negf %63 : vector<2x128xf32>
    %65 = math.exp %64 : vector<2x128xf32>
    %cst_17 = arith.constant 1.000000e+00 : f32
    %66 = vector.broadcast %cst_17 : f32 to vector<2x128xf32>
    %67 = arith.addf %66, %65 : vector<2x128xf32>
    %68 = arith.divf %66, %67 : vector<2x128xf32>
    %69 = arith.mulf %68, %37 : vector<2x128xf32>
    %cst_18 = arith.constant 1.000000e+00 : f32
    %70 = vector.broadcast %cst_18 : f32 to vector<2x128xf32>
    %71 = arith.subf %70, %68 : vector<2x128xf32>
    %72 = arith.mulf %71, %62 : vector<2x128xf32>
    %73 = arith.addf %69, %72 : vector<2x128xf32>
    %c1_i32 = arith.constant 1 : i32
    %74 = arith.index_cast %c1_i32 : i32 to index
    %c0_19 = arith.constant 0 : index
    %c0_20 = arith.constant 0 : index
    %75 = vector.load %arg2[%74, %c0_19, %c0_20] : memref<4x2x1152xf32, #tpu.memory_space<vmem>>, vector<1x2x1152xf32>
    %76 = vector.shape_cast %75 : vector<1x2x1152xf32> to vector<2x1152xf32>
    %77 = arith.truncf %73 : vector<2x128xf32> to vector<2x128xbf16>
    %cst_21 = arith.constant dense<0.000000e+00> : vector<2x1152xf32>
    %78 = tpu.matmul %77, %3, %cst_21 {dimension_numbers = #tpu.dot_dimension_numbers<[1], [0], [0], [1], [0, 0, 1, 1], [], []>} : vector<2x128xbf16>, vector<128x1152xbf16>, vector<2x1152xf32> -> vector<2x1152xf32>
    %79 = arith.addf %76, %78 : vector<2x1152xf32>
    %80 = vector.extract_strided_slice %79 {offsets = [0, 0], sizes = [2, 128], strides = [1, 1]} : vector<2x1152xf32> to vector<2x128xf32>
    %81 = arith.negf %80 : vector<2x128xf32>
    %82 = math.exp %81 : vector<2x128xf32>
    %cst_22 = arith.constant 1.000000e+00 : f32
    %83 = vector.broadcast %cst_22 : f32 to vector<2x128xf32>
    %84 = arith.addf %83, %82 : vector<2x128xf32>
    %85 = arith.divf %83, %84 : vector<2x128xf32>
    %86 = arith.mulf %85, %29 : vector<2x128xf32>
    %87 = vector.extract_strided_slice %79 {offsets = [0, 128], sizes = [2, 128], strides = [1, 1]} : vector<2x1152xf32> to vector<2x128xf32>
    %88 = arith.negf %87 : vector<2x128xf32>
    %89 = math.exp %88 : vector<2x128xf32>
    %cst_23 = arith.constant 1.000000e+00 : f32
    %90 = vector.broadcast %cst_23 : f32 to vector<2x128xf32>
    %91 = arith.addf %90, %89 : vector<2x128xf32>
    %92 = arith.divf %90, %91 : vector<2x128xf32>
    %93 = vector.extract_strided_slice %79 {offsets = [0, 256], sizes = [2, 128], strides = [1, 1]} : vector<2x1152xf32> to vector<2x128xf32>
    %94 = math.tanh %93 : vector<2x128xf32>
    %95 = arith.mulf %92, %94 : vector<2x128xf32>
    %96 = arith.addf %86, %95 : vector<2x128xf32>
    %97 = vector.extract_strided_slice %79 {offsets = [0, 384], sizes = [2, 128], strides = [1, 1]} : vector<2x1152xf32> to vector<2x128xf32>
    %98 = arith.negf %97 : vector<2x128xf32>
    %99 = math.exp %98 : vector<2x128xf32>
    %cst_24 = arith.constant 1.000000e+00 : f32
    %100 = vector.broadcast %cst_24 : f32 to vector<2x128xf32>
    %101 = arith.addf %100, %99 : vector<2x128xf32>
    %102 = arith.divf %100, %101 : vector<2x128xf32>
    %103 = math.tanh %96 : vector<2x128xf32>
    %104 = arith.mulf %102, %103 : vector<2x128xf32>
    %105 = vector.extract_strided_slice %79 {offsets = [0, 512], sizes = [2, 128], strides = [1, 1]} : vector<2x1152xf32> to vector<2x128xf32>
    %106 = arith.negf %105 : vector<2x128xf32>
    %107 = math.exp %106 : vector<2x128xf32>
    %cst_25 = arith.constant 1.000000e+00 : f32
    %108 = vector.broadcast %cst_25 : f32 to vector<2x128xf32>
    %109 = arith.addf %108, %107 : vector<2x128xf32>
    %110 = arith.divf %108, %109 : vector<2x128xf32>
    %111 = arith.mulf %110, %54 : vector<2x128xf32>
    %112 = vector.extract_strided_slice %79 {offsets = [0, 640], sizes = [2, 128], strides = [1, 1]} : vector<2x1152xf32> to vector<2x128xf32>
    %113 = arith.negf %112 : vector<2x128xf32>
    %114 = math.exp %113 : vector<2x128xf32>
    %cst_26 = arith.constant 1.000000e+00 : f32
    %115 = vector.broadcast %cst_26 : f32 to vector<2x128xf32>
    %116 = arith.addf %115, %114 : vector<2x128xf32>
    %117 = arith.divf %115, %116 : vector<2x128xf32>
    %118 = vector.extract_strided_slice %79 {offsets = [0, 768], sizes = [2, 128], strides = [1, 1]} : vector<2x1152xf32> to vector<2x128xf32>
    %119 = math.tanh %118 : vector<2x128xf32>
    %120 = arith.mulf %117, %119 : vector<2x128xf32>
    %121 = arith.addf %111, %120 : vector<2x128xf32>
    %122 = vector.extract_strided_slice %79 {offsets = [0, 896], sizes = [2, 128], strides = [1, 1]} : vector<2x1152xf32> to vector<2x128xf32>
    %123 = arith.negf %122 : vector<2x128xf32>
    %124 = math.exp %123 : vector<2x128xf32>
    %cst_27 = arith.constant 1.000000e+00 : f32
    %125 = vector.broadcast %cst_27 : f32 to vector<2x128xf32>
    %126 = arith.addf %125, %124 : vector<2x128xf32>
    %127 = arith.divf %125, %126 : vector<2x128xf32>
    %128 = math.tanh %121 : vector<2x128xf32>
    %129 = arith.mulf %127, %128 : vector<2x128xf32>
    %130 = vector.extract_strided_slice %79 {offsets = [0, 1024], sizes = [2, 128], strides = [1, 1]} : vector<2x1152xf32> to vector<2x128xf32>
    %131 = arith.negf %130 : vector<2x128xf32>
    %132 = math.exp %131 : vector<2x128xf32>
    %cst_28 = arith.constant 1.000000e+00 : f32
    %133 = vector.broadcast %cst_28 : f32 to vector<2x128xf32>
    %134 = arith.addf %133, %132 : vector<2x128xf32>
    %135 = arith.divf %133, %134 : vector<2x128xf32>
    %136 = arith.mulf %135, %104 : vector<2x128xf32>
    %cst_29 = arith.constant 1.000000e+00 : f32
    %137 = vector.broadcast %cst_29 : f32 to vector<2x128xf32>
    %138 = arith.subf %137, %135 : vector<2x128xf32>
    %139 = arith.mulf %138, %129 : vector<2x128xf32>
    %140 = arith.addf %136, %139 : vector<2x128xf32>
    %c2_i32 = arith.constant 2 : i32
    %141 = arith.index_cast %c2_i32 : i32 to index
    %c0_30 = arith.constant 0 : index
    %c0_31 = arith.constant 0 : index
    %142 = vector.load %arg2[%141, %c0_30, %c0_31] : memref<4x2x1152xf32, #tpu.memory_space<vmem>>, vector<1x2x1152xf32>
    %143 = vector.shape_cast %142 : vector<1x2x1152xf32> to vector<2x1152xf32>
    %144 = arith.truncf %140 : vector<2x128xf32> to vector<2x128xbf16>
    %cst_32 = arith.constant dense<0.000000e+00> : vector<2x1152xf32>
    %145 = tpu.matmul %144, %3, %cst_32 {dimension_numbers = #tpu.dot_dimension_numbers<[1], [0], [0], [1], [0, 0, 1, 1], [], []>} : vector<2x128xbf16>, vector<128x1152xbf16>, vector<2x1152xf32> -> vector<2x1152xf32>
    %146 = arith.addf %143, %145 : vector<2x1152xf32>
    %147 = vector.extract_strided_slice %146 {offsets = [0, 0], sizes = [2, 128], strides = [1, 1]} : vector<2x1152xf32> to vector<2x128xf32>
    %148 = arith.negf %147 : vector<2x128xf32>
    %149 = math.exp %148 : vector<2x128xf32>
    %cst_33 = arith.constant 1.000000e+00 : f32
    %150 = vector.broadcast %cst_33 : f32 to vector<2x128xf32>
    %151 = arith.addf %150, %149 : vector<2x128xf32>
    %152 = arith.divf %150, %151 : vector<2x128xf32>
    %153 = arith.mulf %152, %96 : vector<2x128xf32>
    %154 = vector.extract_strided_slice %146 {offsets = [0, 128], sizes = [2, 128], strides = [1, 1]} : vector<2x1152xf32> to vector<2x128xf32>
    %155 = arith.negf %154 : vector<2x128xf32>
    %156 = math.exp %155 : vector<2x128xf32>
    %cst_34 = arith.constant 1.000000e+00 : f32
    %157 = vector.broadcast %cst_34 : f32 to vector<2x128xf32>
    %158 = arith.addf %157, %156 : vector<2x128xf32>
    %159 = arith.divf %157, %158 : vector<2x128xf32>
    %160 = vector.extract_strided_slice %146 {offsets = [0, 256], sizes = [2, 128], strides = [1, 1]} : vector<2x1152xf32> to vector<2x128xf32>
    %161 = math.tanh %160 : vector<2x128xf32>
    %162 = arith.mulf %159, %161 : vector<2x128xf32>
    %163 = arith.addf %153, %162 : vector<2x128xf32>
    %164 = vector.extract_strided_slice %146 {offsets = [0, 384], sizes = [2, 128], strides = [1, 1]} : vector<2x1152xf32> to vector<2x128xf32>
    %165 = arith.negf %164 : vector<2x128xf32>
    %166 = math.exp %165 : vector<2x128xf32>
    %cst_35 = arith.constant 1.000000e+00 : f32
    %167 = vector.broadcast %cst_35 : f32 to vector<2x128xf32>
    %168 = arith.addf %167, %166 : vector<2x128xf32>
    %169 = arith.divf %167, %168 : vector<2x128xf32>
    %170 = math.tanh %163 : vector<2x128xf32>
    %171 = arith.mulf %169, %170 : vector<2x128xf32>
    %172 = vector.extract_strided_slice %146 {offsets = [0, 512], sizes = [2, 128], strides = [1, 1]} : vector<2x1152xf32> to vector<2x128xf32>
    %173 = arith.negf %172 : vector<2x128xf32>
    %174 = math.exp %173 : vector<2x128xf32>
    %cst_36 = arith.constant 1.000000e+00 : f32
    %175 = vector.broadcast %cst_36 : f32 to vector<2x128xf32>
    %176 = arith.addf %175, %174 : vector<2x128xf32>
    %177 = arith.divf %175, %176 : vector<2x128xf32>
    %178 = arith.mulf %177, %121 : vector<2x128xf32>
    %179 = vector.extract_strided_slice %146 {offsets = [0, 640], sizes = [2, 128], strides = [1, 1]} : vector<2x1152xf32> to vector<2x128xf32>
    %180 = arith.negf %179 : vector<2x128xf32>
    %181 = math.exp %180 : vector<2x128xf32>
    %cst_37 = arith.constant 1.000000e+00 : f32
    %182 = vector.broadcast %cst_37 : f32 to vector<2x128xf32>
    %183 = arith.addf %182, %181 : vector<2x128xf32>
    %184 = arith.divf %182, %183 : vector<2x128xf32>
    %185 = vector.extract_strided_slice %146 {offsets = [0, 768], sizes = [2, 128], strides = [1, 1]} : vector<2x1152xf32> to vector<2x128xf32>
    %186 = math.tanh %185 : vector<2x128xf32>
    %187 = arith.mulf %184, %186 : vector<2x128xf32>
    %188 = arith.addf %178, %187 : vector<2x128xf32>
    %189 = vector.extract_strided_slice %146 {offsets = [0, 896], sizes = [2, 128], strides = [1, 1]} : vector<2x1152xf32> to vector<2x128xf32>
    %190 = arith.negf %189 : vector<2x128xf32>
    %191 = math.exp %190 : vector<2x128xf32>
    %cst_38 = arith.constant 1.000000e+00 : f32
    %192 = vector.broadcast %cst_38 : f32 to vector<2x128xf32>
    %193 = arith.addf %192, %191 : vector<2x128xf32>
    %194 = arith.divf %192, %193 : vector<2x128xf32>
    %195 = math.tanh %188 : vector<2x128xf32>
    %196 = arith.mulf %194, %195 : vector<2x128xf32>
    %197 = vector.extract_strided_slice %146 {offsets = [0, 1024], sizes = [2, 128], strides = [1, 1]} : vector<2x1152xf32> to vector<2x128xf32>
    %198 = arith.negf %197 : vector<2x128xf32>
    %199 = math.exp %198 : vector<2x128xf32>
    %cst_39 = arith.constant 1.000000e+00 : f32
    %200 = vector.broadcast %cst_39 : f32 to vector<2x128xf32>
    %201 = arith.addf %200, %199 : vector<2x128xf32>
    %202 = arith.divf %200, %201 : vector<2x128xf32>
    %203 = arith.mulf %202, %171 : vector<2x128xf32>
    %cst_40 = arith.constant 1.000000e+00 : f32
    %204 = vector.broadcast %cst_40 : f32 to vector<2x128xf32>
    %205 = arith.subf %204, %202 : vector<2x128xf32>
    %206 = arith.mulf %205, %196 : vector<2x128xf32>
    %207 = arith.addf %203, %206 : vector<2x128xf32>
    %c3_i32 = arith.constant 3 : i32
    %208 = arith.index_cast %c3_i32 : i32 to index
    %c0_41 = arith.constant 0 : index
    %c0_42 = arith.constant 0 : index
    %209 = vector.load %arg2[%208, %c0_41, %c0_42] : memref<4x2x1152xf32, #tpu.memory_space<vmem>>, vector<1x2x1152xf32>
    %210 = vector.shape_cast %209 : vector<1x2x1152xf32> to vector<2x1152xf32>
    %211 = arith.truncf %207 : vector<2x128xf32> to vector<2x128xbf16>
    %cst_43 = arith.constant dense<0.000000e+00> : vector<2x1152xf32>
    %212 = tpu.matmul %211, %3, %cst_43 {dimension_numbers = #tpu.dot_dimension_numbers<[1], [0], [0], [1], [0, 0, 1, 1], [], []>} : vector<2x128xbf16>, vector<128x1152xbf16>, vector<2x1152xf32> -> vector<2x1152xf32>
    %213 = arith.addf %210, %212 : vector<2x1152xf32>
    %214 = vector.extract_strided_slice %213 {offsets = [0, 0], sizes = [2, 128], strides = [1, 1]} : vector<2x1152xf32> to vector<2x128xf32>
    %215 = arith.negf %214 : vector<2x128xf32>
    %216 = math.exp %215 : vector<2x128xf32>
    %cst_44 = arith.constant 1.000000e+00 : f32
    %217 = vector.broadcast %cst_44 : f32 to vector<2x128xf32>
    %218 = arith.addf %217, %216 : vector<2x128xf32>
    %219 = arith.divf %217, %218 : vector<2x128xf32>
    %220 = arith.mulf %219, %163 : vector<2x128xf32>
    %221 = vector.extract_strided_slice %213 {offsets = [0, 128], sizes = [2, 128], strides = [1, 1]} : vector<2x1152xf32> to vector<2x128xf32>
    %222 = arith.negf %221 : vector<2x128xf32>
    %223 = math.exp %222 : vector<2x128xf32>
    %cst_45 = arith.constant 1.000000e+00 : f32
    %224 = vector.broadcast %cst_45 : f32 to vector<2x128xf32>
    %225 = arith.addf %224, %223 : vector<2x128xf32>
    %226 = arith.divf %224, %225 : vector<2x128xf32>
    %227 = vector.extract_strided_slice %213 {offsets = [0, 256], sizes = [2, 128], strides = [1, 1]} : vector<2x1152xf32> to vector<2x128xf32>
    %228 = math.tanh %227 : vector<2x128xf32>
    %229 = arith.mulf %226, %228 : vector<2x128xf32>
    %230 = arith.addf %220, %229 : vector<2x128xf32>
    %231 = vector.extract_strided_slice %213 {offsets = [0, 384], sizes = [2, 128], strides = [1, 1]} : vector<2x1152xf32> to vector<2x128xf32>
    %232 = arith.negf %231 : vector<2x128xf32>
    %233 = math.exp %232 : vector<2x128xf32>
    %cst_46 = arith.constant 1.000000e+00 : f32
    %234 = vector.broadcast %cst_46 : f32 to vector<2x128xf32>
    %235 = arith.addf %234, %233 : vector<2x128xf32>
    %236 = arith.divf %234, %235 : vector<2x128xf32>
    %237 = math.tanh %230 : vector<2x128xf32>
    %238 = arith.mulf %236, %237 : vector<2x128xf32>
    %239 = vector.extract_strided_slice %213 {offsets = [0, 512], sizes = [2, 128], strides = [1, 1]} : vector<2x1152xf32> to vector<2x128xf32>
    %240 = arith.negf %239 : vector<2x128xf32>
    %241 = math.exp %240 : vector<2x128xf32>
    %cst_47 = arith.constant 1.000000e+00 : f32
    %242 = vector.broadcast %cst_47 : f32 to vector<2x128xf32>
    %243 = arith.addf %242, %241 : vector<2x128xf32>
    %244 = arith.divf %242, %243 : vector<2x128xf32>
    %245 = arith.mulf %244, %188 : vector<2x128xf32>
    %246 = vector.extract_strided_slice %213 {offsets = [0, 640], sizes = [2, 128], strides = [1, 1]} : vector<2x1152xf32> to vector<2x128xf32>
    %247 = arith.negf %246 : vector<2x128xf32>
    %248 = math.exp %247 : vector<2x128xf32>
    %cst_48 = arith.constant 1.000000e+00 : f32
    %249 = vector.broadcast %cst_48 : f32 to vector<2x128xf32>
    %250 = arith.addf %249, %248 : vector<2x128xf32>
    %251 = arith.divf %249, %250 : vector<2x128xf32>
    %252 = vector.extract_strided_slice %213 {offsets = [0, 768], sizes = [2, 128], strides = [1, 1]} : vector<2x1152xf32> to vector<2x128xf32>
    %253 = math.tanh %252 : vector<2x128xf32>
    %254 = arith.mulf %251, %253 : vector<2x128xf32>
    %255 = arith.addf %245, %254 : vector<2x128xf32>
    %256 = vector.extract_strided_slice %213 {offsets = [0, 896], sizes = [2, 128], strides = [1, 1]} : vector<2x1152xf32> to vector<2x128xf32>
    %257 = arith.negf %256 : vector<2x128xf32>
    %258 = math.exp %257 : vector<2x128xf32>
    %cst_49 = arith.constant 1.000000e+00 : f32
    %259 = vector.broadcast %cst_49 : f32 to vector<2x128xf32>
    %260 = arith.addf %259, %258 : vector<2x128xf32>
    %261 = arith.divf %259, %260 : vector<2x128xf32>
    %262 = math.tanh %255 : vector<2x128xf32>
    %263 = arith.mulf %261, %262 : vector<2x128xf32>
    %264 = vector.extract_strided_slice %213 {offsets = [0, 1024], sizes = [2, 128], strides = [1, 1]} : vector<2x1152xf32> to vector<2x128xf32>
    %265 = arith.negf %264 : vector<2x128xf32>
    %266 = math.exp %265 : vector<2x128xf32>
    %cst_50 = arith.constant 1.000000e+00 : f32
    %267 = vector.broadcast %cst_50 : f32 to vector<2x128xf32>
    %268 = arith.addf %267, %266 : vector<2x128xf32>
    %269 = arith.divf %267, %268 : vector<2x128xf32>
    %270 = arith.mulf %269, %238 : vector<2x128xf32>
    %cst_51 = arith.constant 1.000000e+00 : f32
    %271 = vector.broadcast %cst_51 : f32 to vector<2x128xf32>
    %272 = arith.subf %271, %269 : vector<2x128xf32>
    %273 = arith.mulf %272, %263 : vector<2x128xf32>
    %274 = arith.addf %270, %273 : vector<2x128xf32>
    %c4_i32 = arith.constant 4 : i32
    %c0_52 = arith.constant 0 : index
    %c0_53 = arith.constant 0 : index
    %275 = vector.load %arg8[%c0_52, %c0_53] : memref<2x128xf32, #tpu.memory_space<vmem>>, vector<2x128xf32>
    tpu.vector_store %arg8[%c0_52, %c0_53], %274 {strides = array<i32>} : memref<2x128xf32, #tpu.memory_space<vmem>>, vector<2x128xf32>,
    %c0_54 = arith.constant 0 : index
    %c0_55 = arith.constant 0 : index
    %276 = vector.load %arg6[%c0_54, %c0_55] : memref<2x128xf32, #tpu.memory_space<vmem>>, vector<2x128xf32>
    tpu.vector_store %arg6[%c0_54, %c0_55], %230 {strides = array<i32>} : memref<2x128xf32, #tpu.memory_space<vmem>>, vector<2x128xf32>,
    %c0_56 = arith.constant 0 : index
    %c0_57 = arith.constant 0 : index
    %277 = vector.load %arg7[%c0_56, %c0_57] : memref<2x128xf32, #tpu.memory_space<vmem>>, vector<2x128xf32>
    tpu.vector_store %arg7[%c0_56, %c0_57], %255 {strides = array<i32>} : memref<2x128xf32, #tpu.memory_space<vmem>>, vector<2x128xf32>,
    %c1_i32_58 = arith.constant 1 : i32
    %278 = arith.cmpi eq, %arg1, %c1_i32_58 : i32
    %279 = arith.extui %278 : i1 to i32
    %c0_i32_59 = arith.constant 0 : i32
    %280 = arith.cmpi ne, %279, %c0_i32_59 : i32
    scf.if %280 {
      %281 = arith.truncf %274 : vector<2x128xf32> to vector<2x128xbf16>
      %c0_60 = arith.constant 0 : index
      %c0_61 = arith.constant 0 : index
      %282 = vector.load %arg4[%c0_60, %c0_61] : memref<128x128xbf16, #tpu.memory_space<vmem>>, vector<128x128xbf16>
      %cst_62 = arith.constant dense<0.000000e+00> : vector<2x128xf32>
      %283 = tpu.matmul %281, %282, %cst_62 {dimension_numbers = #tpu.dot_dimension_numbers<[1], [0], [0], [1], [0, 0, 1, 1], [], []>} : vector<2x128xbf16>, vector<128x128xbf16>, vector<2x128xf32> -> vector<2x128xf32>
      %c0_63 = arith.constant 0 : index
      %c0_64 = arith.constant 0 : index
      %284 = vector.load %arg5[%c0_63, %c0_64] : memref<1x128xf32, #tpu.memory_space<vmem>>, vector<1x128xf32>
      %285 = vector.broadcast %284 : vector<1x128xf32> to vector<2x128xf32>
      %286 = arith.addf %283, %285 : vector<2x128xf32>
      %c0_65 = arith.constant 0 : index
      %c0_66 = arith.constant 0 : index
      %287 = vector.load %arg9[%c0_65, %c0_66] : memref<2x128xf32, #tpu.memory_space<vmem>>, vector<2x128xf32>
      tpu.vector_store %arg9[%c0_65, %c0_66], %286 {strides = array<i32>} : memref<2x128xf32, #tpu.memory_space<vmem>>, vector<2x128xf32>,
    } else {
    }
    return
  }
  func.func @transform_0(%arg0: i32, %arg1: i32) -> (i32, i32, i32) {
    %c0_i32 = arith.constant 0 : i32
    %c0_i32_0 = arith.constant 0 : i32
    return %arg1, %arg0, %c0_i32 : i32, i32, i32
  }
  func.func @transform_1(%arg0: i32, %arg1: i32) -> (i32, i32) {
    %c0_i32 = arith.constant 0 : i32
    %c0_i32_0 = arith.constant 0 : i32
    %c0_i32_1 = arith.constant 0 : i32
    return %c0_i32, %c0_i32_0 : i32, i32
  }
  func.func @transform_2(%arg0: i32, %arg1: i32) -> (i32, i32) {
    %c0_i32 = arith.constant 0 : i32
    %c0_i32_0 = arith.constant 0 : i32
    %c0_i32_1 = arith.constant 0 : i32
    return %c0_i32, %c0_i32_0 : i32, i32
  }
  func.func @transform_3(%arg0: i32, %arg1: i32) -> (i32, i32) {
    %c0_i32 = arith.constant 0 : i32
    %c0_i32_0 = arith.constant 0 : i32
    %c0_i32_1 = arith.constant 0 : i32
    return %c0_i32, %c0_i32_0 : i32, i32
  }
  func.func @transform_4(%arg0: i32, %arg1: i32) -> (i32, i32) {
    %c0_i32 = arith.constant 0 : i32
    %c0_i32_0 = arith.constant 0 : i32
    return %arg0, %c0_i32 : i32, i32
  }
  func.func @transform_5(%arg0: i32, %arg1: i32) -> (i32, i32) {
    %c0_i32 = arith.constant 0 : i32
    %c0_i32_0 = arith.constant 0 : i32
    return %arg0, %c0_i32 : i32, i32
  }
  func.func @transform_6(%arg0: i32, %arg1: i32) -> (i32, i32) {
    %c0_i32 = arith.constant 0 : i32
    %c0_i32_0 = arith.constant 0 : i32
    return %arg0, %c0_i32 : i32, i32
  }
  func.func @transform_7(%arg0: i32, %arg1: i32) -> (i32, i32) {
    %c0_i32 = arith.constant 0 : i32
    %c0_i32_0 = arith.constant 0 : i32
    return %arg0, %c0_i32 : i32, i32
  }
}

</mosaic_0001>

<bundles_post_ra>
// kernel: tpu_custom_call.1
= control target key start
LH: loop header
LB: loop body
LE: loop exit
PB: predicated region body
PF: predicated region fallthrough
CT: control target
= control target key end

     0   :  { %13 = vsyncpa [#allocation3], 0  ;;  %s4280_s0 = inlined_call_operand.hbm [shape: f32[8,2,1152], index: 0, kind: input, shape index: {}]   ;;  %s4281_s1 = inlined_call_operand.hbm [shape: bf16[128,1152], index: 1, kind: input, shape index: {}]   ;;  %s4282_s2 = inlined_call_operand.hbm [shape: bf16[128,128], index: 2, kind: input, shape index: {}]   ;;  %s4283_s3 = inlined_call_operand.vmem [shape: f32[1,128], index: 3, kind: input, shape index: {}]   ;;  %s4284_s4 = inlined_call_operand.hbm [shape: f32[2,128], index: 4, kind: output, shape index: {0}]   ;;  %s4285_s5 = inlined_call_operand.hbm [shape: f32[2,128], index: 5, kind: output, shape index: {1}]   ;;  %s4286_s6 = inlined_call_operand.hbm [shape: f32[2,128], index: 6, kind: output, shape index: {2}]   ;;  %s4287_s7 = inlined_call_operand.hbm [shape: f32[2,128], index: 7, kind: output, shape index: {3}]  }
   0x1   :  { %15 = vsyncpa [#allocation3 + $0x1], 0 }
   0x2   :  { %16 = vsyncpa [#allocation6], 0 }
   0x3   :  { %17 = vsyncpa [#allocation4], 0 }
   0x4   :  { %18 = vsyncpa [#allocation10], 0 }
   0x5   :  { %19 = vsyncpa [#allocation13], 0  ;;  %s3493_s24 = smov 0   ;;  %s3495_s25 = smov 0  }
   0x6   :  { %s3497_s26 = smov 0   ;;  %s3499_s27 = smov 0  }
   0x7   :  { %s3501_s28 = smov 0   ;;  %s3503_s29 = smov 0  }
   0x8 LB: > { %s4292_s30 = sadd.s32 4294967295, %s3431_s29   ;;  %p59_p0 = scmp.ne.s32.totalorder %s3415_s25, %s3411_s24  ;;  %s3431_s29 = sphi %s3503_s29, %s25_s29   ;;  %s3427_s28 = sphi %s3501_s28, %s4421_s28   ;;  %s3423_s27 = sphi %s3499_s27, %s4420_s27   ;;  %s3419_s26 = sphi %s3497_s26, %s4419_s26   ;;  %s3415_s25 = sphi %s3495_s25, %s4418_s25   ;;  %s3411_s24 = sphi %s3493_s24, %s4417_s24  }
   0x9   : > { %p3525_p1 = scmp.eq.s32.totalorder %s4292_s30, 0  ;;  %p2442_p2 = scmp.ge.s32.totalorder %s3431_s29, 1 }
   0xa   : > { %p237_p3 = scmp.lt.s32.totalorder %s3431_s29, 3  ;;  %s3433_s11 = smov [#allocation5]  }
   0xb   : > { %s4340_s8 = scalar_select %p3525_p1, 1, 0 }
   0xc   : > { %p3533_p4 = por %p3525_p1, %p59_p0  ;;  %p3537_p5 = pnand %p2442_p2, %p237_p3 }
   0xd   : > { %s249_s12 = sshll.u32 %s3433_s11, 4  ;;  %s3434_s14 = smov [#allocation7]   ;;  %s250_s12 = int_to_ptr.vmem [resolvable:$true] %s249_s12 }
   0xe   : > { %s4341_s9 = scalar_select %p3533_p4, 1, 0 }
   0xf   : > { %s4342_s10 = scalar_select %p3537_p5, 1, 0 }
  0x10   : > { %p2756_p6 = pneg %p3537_p5  ;;  %s262_s15 = sshll.u32 %s3434_s14, 4  ;;  %s3549_s15 = int_to_ptr.vmem [resolvable:$true] %s262_s15 }
  0x11   : > { %s3175_s18 = scalar_lea.hbm %s4281_s1, 9216 }
  0x12   : > { %p3545_p7 = pnand %p2756_p6, %p3525_p1  ;;  %p3176_p8 = scmp.ne.s32.totalorder %s4281_s1, %s3175_s18 }
  0x13   : > { %p3182_p12 = scmp.lt.u32.totalorder %s3175_s18, %s4281_s1 }
  0x14   : > { %p3177_p9 = pneg %p3545_p7 }
  0x16   : > { %p3178_p10 = pnand %p3177_p9, %p3176_p8 }
  0x18   : > { %p3179_p11 = pneg %p3178_p10 }
  0x1a   : > { %p3184_p13 = pnand %p3182_p12, %p3179_p11 }
  0x1c   : > { %3187 = shalt.err (!%p3184_p13)
}
  0x1d   : > { %s3188_s23 = scalar_lea.vmem %s250_s12, 9216  ;;  %p3196_p6 = scmp.lt.s32.totalorder %s250_s12, %s250_s12 }
  0x1e   : > { %p3189_p0 = scmp.ne.s32.totalorder %s250_s12, %s3188_s23  ;;  %p3197_p1 = scmp.lt.s32.totalorder %s3188_s23, %s3188_s23 }
  0x20   : > { %p3191_p2 = pnand %p3189_p0, %p3177_p9  ;;  %p3198_p4 = por %p3197_p1, %p3196_p6 }
  0x22   : > { %p3192_p3 = pneg %p3191_p2 }
  0x24   : > { %p3199_p5 = pnand %p3198_p4, %p3192_p3 }
  0x26   : > { %3202 = shalt.err (!%p3199_p5)
}
  0x27   : > { %s3435_s24 = smov 576   ;;  %s3436_s11 = smov 36  }
  0x28   : > { %2759 = dma.hbm_to_vmem [thread:$0]  (!%p3545_p7), %s4281_s1, 9216, %s250_s12, [#allocation6], %s3435_s24, %s3435_s24, %s3436_s11  }
  0x29   : > { %s3203_s19 = scalar_lea.hbm %s4282_s2, 1024 }
  0x2a   : > { %p3204_p8 = scmp.ne.s32.totalorder %s4282_s2, %s3203_s19  ;;  %p3210_p5 = scmp.lt.u32.totalorder %s3203_s19, %s4282_s2 }
  0x2c   : > { %p3206_p1 = pnand %p3204_p8, %p3177_p9 }
  0x2e   : > { %p3207_p4 = pneg %p3206_p1 }
  0x30   : > { %p3212_p10 = pnand %p3210_p5, %p3207_p4 }
  0x32   : > { %3215 = shalt.err (!%p3212_p10)
}
  0x33   : > { %s3216_s12 = scalar_lea.vmem %s3549_s15, 1024  ;;  %p3224_p0 = scmp.lt.s32.totalorder %s3549_s15, %s3549_s15 }
  0x34   : > { %p3217_p11 = scmp.ne.s32.totalorder %s3549_s15, %s3216_s12  ;;  %p3225_p2 = scmp.lt.s32.totalorder %s3216_s12, %s3216_s12 }
  0x36   : > { %p3219_p12 = pnand %p3217_p11, %p3177_p9  ;;  %p3226_p3 = por %p3225_p2, %p3224_p0 }
  0x38   : > { %p3220_p13 = pneg %p3219_p12 }
  0x3a   : > { %p3227_p6 = pnand %p3226_p3, %p3220_p13 }
  0x3c   : > { %3230 = shalt.err (!%p3227_p6)
}
  0x3d   : > { %s3437_s24 = smov 64   ;;  %s3438_s11 = smov 4  }
  0x3e   : > { %2762 = dma.hbm_to_vmem [thread:$0]  (!%p3545_p7), %s4282_s2, 1024, %s3549_s15, [#allocation6], %s3437_s24, %s3437_s24, %s3438_s11  }
  0x3f   : > { %s34_s17 = sadd.s32 1, %s3427_s28  ;;  %s46_s18 = sadd.s32 1, %s3419_s26 }
  0x40   : > { %p35_p9 = scmp.ge.s32.totalorder %s34_s17, 2  ;;  %p53_p8 = scmp.ne.s32.totalorder %s3419_s26, %s3415_s25 }
  0x41   : > { %p54_p1 = scmp.eq.s32.totalorder %s3431_s29, 0  ;;  %p2769_p4 = scmp.lt.s32.totalorder %s3431_s29, 2 }
  0x42   : > { %s4423_s17 = smov (%p35_p9, %s34_s17), 0  ;;  %s279_s19 = sand.u32 1, %s3419_s26  }
  0x43   : > { %p55_p5 = por %p54_p1, %p53_p8  ;;  %s41_s20 = ssub.s32 %s3427_s28, %s4423_s17 }
  0x44   : > { %p44_p10 = scmp.eq.s32.totalorder %s41_s20, 0  ;;  %s2727_s21 = smul.u32 72, %s279_s19 }
  0x45   : > { %s2728_s13 = smul.u32 1152, %s3427_s28  ;;  %p3610_p11 = pnand %p2769_p4, %p55_p5 }
  0x46   : > { %s3615_s15 = scalar_select %p44_p10, %s3419_s26, %s46_s18  }
  0x47   : > { %s3620_s24 = scalar_lea.hbm %s4280_s0, %s2728_s13  ;;  %s283_s11 = scalar_lea.vmem [#allocation2], %s2727_s21 }
  0x48   : > { %s293_s14 = sshll.u32 %s283_s11, 4  ;;  %s3624_s16 = scalar_lea.sflag [#allocation3], %s279_s19  ;;  %s3622_s14 = int_to_ptr.vmem [resolvable:$true] %s293_s14 }
  0x49   : > { %s3231_s20 = scalar_lea.hbm %s3620_s24, 1152  ;;  %p3233_p12 = pneg %p3610_p11 }
  0x4a   : > { %p3232_p7 = scmp.ne.s32.totalorder %s3620_s24, %s3231_s20  ;;  %s3236_s23 = scalar_lea.hbm %s4280_s0, 2304 }
  0x4b   : > { %p3237_p2 = scmp.lt.u32.totalorder %s3620_s24, %s4280_s0  ;;  %p3238_p3 = scmp.lt.u32.totalorder %s3236_s23, %s3231_s20 }
  0x4c   : > { %p3234_p13 = pnand %p3233_p12, %p3232_p7  ;;  %p3240_p9 = scmp.lt.u32.totalorder %s3231_s20, %s3620_s24 }
  0x4d   : > { %p3239_p6 = por %p3238_p3, %p3237_p2 }
  0x4e   : > { %p3235_p0 = pneg %p3234_p13 }
  0x4f   : > { %p3241_p8 = por %p3240_p9, %p3239_p6 }
  0x51   : > { %p3242_p1 = pnand %p3241_p8, %p3235_p0 }
  0x53   : > { %3245 = shalt.err (!%p3242_p1)
}
  0x54   : > { %s3246_s19 = scalar_lea.vmem %s3622_s14, 1152  ;;  %s3439_s21 = smov [#allocation2]  }
  0x55   : > { %p3247_p4 = scmp.ne.s32.totalorder %s3622_s14, %s3246_s19  ;;  %s3251_s11 = sshll.u32 %s3439_s21, 4  ;;  %s3252_s11 = int_to_ptr.vmem [resolvable:$false] %s3251_s11 }
  0x56   : > { %s3253_s30 = scalar_lea.vmem %s3252_s11, 2304  ;;  %p3254_p7 = scmp.lt.s32.totalorder %s3622_s14, %s3252_s11 }
  0x57   : > { %p3249_p5 = pnand %p3247_p4, %p3233_p12  ;;  %p3255_p13 = scmp.lt.s32.totalorder %s3253_s30, %s3246_s19 }
  0x59   : > { %p3250_p10 = pneg %p3249_p5  ;;  %p3256_p2 = por %p3255_p13, %p3254_p7 }
  0x5b   : > { %p3257_p3 = pnand %p3256_p2, %p3250_p10 }
  0x5d   : > { %3260 = shalt.err (!%p3257_p3)
}
  0x5e   : > { %s3440_s20 = smov 288   ;;  %s3441_s18 = smov 18  }
  0x5f   : > { %2766 = dma.hbm_to_vmem [thread:$0]  (!%p3610_p11), %s3620_s24, 1152, %s3622_s14, %s3624_s16, %s3440_s20, %s3440_s20, %s3441_s18  }
  0x60   : > { %p4345_p12 = scmp.ne.s32.totalorder %s4342_s10, 0 }
  0x62   : > { %305 = sbr.rel (%p4345_p12) target bundleno = 1723 (0x6bb), region = 36 }
  0x69   : > { %s307_s13 = sand.u32 1, %s3415_s25   ;;  %p4346_p0 = scmp.ne.s32.totalorder %s4341_s9, 0 }
  0x6a   : > { %s2729_s23 = smul.u32 72, %s307_s13  ;;  %s308_s12 = scalar_lea.sflag [#allocation3], %s307_s13 }
  0x6c   : > { %s3655_s19 = scalar_lea.vmem [#allocation2], %s2729_s23 }
  0x6d   : > { %3390 = dma.done.wait (%p4346_p0), %s308_s12, 1152  }
  0x6e   : > { %3392 = vsyncadd (%p4346_p0), %s308_s12, 4294966144  ;;  %p4347_p6 = scmp.ne.s32.totalorder %s4340_s8, 0 }
  0x70   : > { %3394 = dma.done.wait (%p4347_p6), [#allocation6], 10240  }
  0x71   : > { %3396 = vsyncadd (%p4347_p6), [#allocation6], 4294957056  ;;  %p2452_p11 = scmp.ne.s32.totalorder %s3423_s27, 0 }
  0x72   : > { %v3442_v0 = vmov (!%p2452_p11), 0.0  }
  0x73   : > { %350 = sbr.rel (%p2452_p11) target bundleno = 122 (0x7a), region = 52  ;;  %351 = vst [vmem:[#allocation11] sm:$0x3] (!%p2452_p11), %v3442_v0  ;;  %352 = vst [vmem:[#allocation8] sm:$0x3] (!%p2452_p11), %v3442_v0 }
  0x74   : > { %353 = vst [vmem:[#allocation9] sm:$0x3] (!%p2452_p11), %v3442_v0 }
  0x7a PF: > { %v3666_v1 = vld [vmem:[#allocation5 + $0x4] ss:$36 sps:$4 sm:$0xff]   ;;  %v3668_v2 = vld [vmem:[#allocation5 + $0xc] ss:$36 sps:$4 sm:$0xff]   ;;  %v4293_v3 = vmov 0   ;;  %vm3445_vm0 = vmmov 0  }
  0x7b   : > { %4348 = vst [vmem:[#allocation19_spill] sm:$0xff] %v3666_v1  ;;  %4349 = vst [vmem:[#allocation20_spill] sm:$0xff] %v3668_v2  ;;  %841 = vmatprep.mubr.bf16.mxu0 %v4293_v3  ;;  %882 = vmatprep.mubr.bf16.mxu1 %v4293_v3  ;;  %v3673_v4 = vld [vmem:[#allocation5] ss:$36 sps:$4 sm:$0xff]   ;;  %v3675_v5 = vld [vmem:[#allocation5 + $0x8] ss:$36 sps:$4 sm:$0xff]  }
  0x7c   : > { %809 = vmatprep.subr.bf16.mxu0 %v3666_v1  ;;  %4350 = vst [vmem:[#allocation21_spill] sm:$0xff] %v3675_v5  ;;  %850 = vmatprep.subr.bf16.mxu1 %v3668_v2  ;;  %v3678_v6 = vld [vmem:[#allocation5 + $0x4c] ss:$36 sps:$4 sm:$0xff]   ;;  %v3682_v7 = vld [vmem:[#allocation5 + $0x54] ss:$36 sps:$4 sm:$0xff]   ;;  %p2562_p9 = scmp.ne.s32.totalorder %s3423_s27, 1 }
  0x7d   : > { %810 = vmatpush1.bf16.msra.mxu0 %v3673_v4  ;;  %851 = vmatpush1.bf16.msra.mxu1 %v3675_v5  ;;  %4351 = vst [vmem:[#allocation22_spill] sm:$0xff] %v3682_v7  ;;  %v3684_v8 = vld [vmem:[#allocation5 + $0x48] ss:$36 sps:$4 sm:$0xff]   ;;  %v3687_v9 = vld [vmem:[#allocation5 + $0x50] ss:$36 sps:$4 sm:$0xff]   ;;  %vm3448_vm1 = vmmov (!%p2562_p9), 0  }
  0x7e   : > { %811 = vmatprep.subr.bf16.mxu0 %v3678_v6  ;;  %4352 = vst [vmem:[#allocation23_spill] sm:$0xff] %v3687_v9  ;;  %852 = vmatprep.subr.bf16.mxu1 %v3682_v7  ;;  %v3690_v10 = vld [vmem:[#allocation5 + $0x94] ss:$36 sps:$4 sm:$0xff]   ;;  %v3692_v11 = vld [vmem:[#allocation5 + $0x9c] ss:$36 sps:$4 sm:$0xff]  }
  0x7f   : > { %4353 = vst [vmem:[#allocation24_spill] sm:$0xff] %v3692_v11  ;;  %v3694_v12 = vld [vmem:[#allocation5 + $0x90] ss:$36 sps:$4 sm:$0xff]   ;;  %v3696_v13 = vld [vmem:[#allocation5 + $0x98] ss:$36 sps:$4 sm:$0xff]  }
  0x80   : > { %4354 = vst [vmem:[#allocation25_spill] sm:$0xff] %v3696_v13  ;;  %v3700_v14 = vld [vmem:[#allocation5 + $0xdc] ss:$36 sps:$4 sm:$0xff]   ;;  %v3704_v15 = vld [vmem:[#allocation5 + $0xe4] ss:$36 sps:$4 sm:$0xff]  }
  0x81   : > { %812 = vmatpush1.bf16.msra.mxu0 %v3684_v8  ;;  %853 = vmatpush1.bf16.msra.mxu1 %v3687_v9  ;;  %4355 = vst [vmem:[#allocation26_spill] sm:$0xff] %v3704_v15  ;;  %v3706_v16 = vld [vmem:[#allocation5 + $0xd8] ss:$36 sps:$4 sm:$0xff]   ;;  %v3710_v17 = vld [vmem:[#allocation5 + $0xe0] ss:$36 sps:$4 sm:$0xff]  }
  0x82   : > { %813 = vmatprep.subr.bf16.mxu0 %v3690_v10  ;;  %854 = vmatprep.subr.bf16.mxu1 %v3692_v11  ;;  %4356 = vst [vmem:[#allocation27_spill] sm:$0xff] %v3710_v17  ;;  %v3712_v18 = vld [vmem:[#allocation5 + $0x124] ss:$36 sps:$4 sm:$0xff]   ;;  %v3716_v19 = vld [vmem:[#allocation5 + $0x12c] ss:$36 sps:$4 sm:$0xff]  }
  0x83   : > { %4357 = vst [vmem:[#allocation28_spill] sm:$0xff] %v3716_v19  ;;  %v3718_v20 = vld [vmem:[#allocation5 + $0x120] ss:$36 sps:$4 sm:$0xff]   ;;  %v3720_v21 = vld [vmem:[#allocation5 + $0x128] ss:$36 sps:$4 sm:$0xff]  }
  0x84   : > { %4358 = vst [vmem:[#allocation29_spill] sm:$0xff] %v3720_v21  ;;  %v3724_v22 = vld [vmem:[#allocation5 + $0x16c] ss:$36 sps:$4 sm:$0xff]   ;;  %v3728_v23 = vld [vmem:[#allocation5 + $0x174] ss:$36 sps:$4 sm:$0xff]  }
  0x85   : > { %814 = vmatpush1.bf16.msra.mxu0 %v3694_v12  ;;  %855 = vmatpush1.bf16.msra.mxu1 %v3696_v13  ;;  %4359 = vst [vmem:[#allocation30_spill] sm:$0xff] %v3728_v23  ;;  %v3732_v24 = vld [vmem:[#allocation5 + $0x168] ss:$36 sps:$4 sm:$0xff]   ;;  %v3734_v25 = vld [vmem:[#allocation5 + $0x170] ss:$36 sps:$4 sm:$0xff]  }
  0x86   : > { %815 = vmatprep.subr.bf16.mxu0 %v3700_v14  ;;  %856 = vmatprep.subr.bf16.mxu1 %v3704_v15  ;;  %4360 = vst [vmem:[#allocation31_spill] sm:$0xff] %v3734_v25  ;;  %v3738_v26 = vld [vmem:[#allocation5 + $0x1b4] ss:$36 sps:$4 sm:$0xff]   ;;  %v3740_v27 = vld [vmem:[#allocation5 + $0x1bc] ss:$36 sps:$4 sm:$0xff]  }
  0x87   : > { %4361 = vst [vmem:[#allocation32_spill] sm:$0xff] %v3740_v27  ;;  %v3742_v28 = vld [vmem:[#allocation5 + $0x1b0] ss:$36 sps:$4 sm:$0xff]   ;;  %v3744_v29 = vld [vmem:[#allocation5 + $0x1b8] ss:$36 sps:$4 sm:$0xff]  }
  0x88   : > { %4362 = vst [vmem:[#allocation33_spill] sm:$0xff] %v3744_v29  ;;  %v3748_v30 = vld [vmem:[#allocation5 + $0x1fc] ss:$36 sps:$4 sm:$0xff]   ;;  %v3752_v31 = vld [vmem:[#allocation5 + $0x204] ss:$36 sps:$4 sm:$0xff]  }
  0x89   : > { %816 = vmatpush1.bf16.msra.mxu0 %v3706_v16  ;;  %857 = vmatpush1.bf16.msra.mxu1 %v3710_v17  ;;  %4363 = vst [vmem:[#allocation34_spill] sm:$0xff] %v3748_v30  ;;  %4364 = vst [vmem:[#allocation35_spill] sm:$0xff] %v3752_v31  ;;  %v3754_v32 = vld [vmem:[#allocation5 + $0x1f8] ss:$36 sps:$4 sm:$0xff]   ;;  %v3756_v33 = vld [vmem:[#allocation5 + $0x200] ss:$36 sps:$4 sm:$0xff]  }
  0x8a   : > { %817 = vmatprep.subr.bf16.mxu0 %v3712_v18  ;;  %858 = vmatprep.subr.bf16.mxu1 %v3716_v19  ;;  %4365 = vst [vmem:[#allocation36_spill] sm:$0xff] %v3754_v32  ;;  %4366 = vst [vmem:[#allocation37_spill] sm:$0xff] %v3756_v33  ;;  %v434_v34 = vld [vmem:[#allocation11] sm:$0x3]  ;;  %v3762_v35 = vld [vmem:[#allocation5 + $0x14] ss:$36 sps:$4 sm:$0xff]  }
  0x8b   : > { %4367 = vst [vmem:[#allocation38_spill] sm:$0xff] %v3762_v35  ;;  %v3764_v36 = vld [vmem:[#allocation5 + $0x1c] ss:$36 sps:$4 sm:$0xff]   ;;  %v3766_v37 = vpack.c.bf16 %v434_v34, %v434_v34  ;;  %v3768_v38 = vld [vmem:[#allocation5 + $0x10] ss:$36 sps:$4 sm:$0xff]  }
  0x8c   : > { %4368 = vst [vmem:[#allocation39_spill] sm:$0xff] %v3764_v36  ;;  %v3770_v39 = vld [vmem:[#allocation5 + $0x18] ss:$36 sps:$4 sm:$0xff]   ;;  %v3778_v41 = vld [vmem:[#allocation5 + $0x64] ss:$36 sps:$4 sm:$0xff]  }
  0x8d   : > { %818 = vmatpush1.bf16.msra.mxu0 %v3718_v20  ;;  %859 = vmatpush1.bf16.msra.mxu1 %v3720_v21  ;;  %v3774_v40 = vld [vmem:[#allocation5 + $0x5c] ss:$36 sps:$4 sm:$0xff]   ;;  %v3790_v44 = vld [vmem:[#allocation5 + $0xa4] ss:$36 sps:$4 sm:$0xff]   ;;  %v3792_v45 = vld [vmem:[#allocation5 + $0xac] ss:$36 sps:$4 sm:$0xff]  }
  0x8e   : > { %819 = vmatprep.subr.bf16.mxu0 %v3724_v22  ;;  %860 = vmatprep.subr.bf16.mxu1 %v3728_v23  ;;  %v3782_v42 = vld [vmem:[#allocation5 + $0x58] ss:$36 sps:$4 sm:$0xff]   ;;  %v3786_v43 = vld [vmem:[#allocation5 + $0x60] ss:$36 sps:$4 sm:$0xff]   ;;  %v3798_v47 = vld [vmem:[#allocation5 + $0xa8] ss:$36 sps:$4 sm:$0xff]  }
  0x8f   : > { %v3796_v46 = vld [vmem:[#allocation5 + $0xa0] ss:$36 sps:$4 sm:$0xff]   ;;  %v3802_v48 = vld [vmem:[#allocation5 + $0xec] ss:$36 sps:$4 sm:$0xff]   ;;  %v3806_v49 = vld [vmem:[#allocation5 + $0xf4] ss:$36 sps:$4 sm:$0xff]  }
  0x90   : > { %v3808_v50 = vld [vmem:[#allocation5 + $0xe8] ss:$36 sps:$4 sm:$0xff]   ;;  %v3810_v51 = vld [vmem:[#allocation5 + $0xf0] ss:$36 sps:$4 sm:$0xff]   ;;  %v3818_v53 = vld [vmem:[#allocation5 + $0x13c] ss:$36 sps:$4 sm:$0xff]  }
  0x91   : > { %820 = vmatpush1.bf16.msra.mxu0 %v3732_v24  ;;  %861 = vmatpush1.bf16.msra.mxu1 %v3734_v25  ;;  %v3814_v52 = vld [vmem:[#allocation5 + $0x134] ss:$36 sps:$4 sm:$0xff]   ;;  %v3826_v56 = vld [vmem:[#allocation5 + $0x17c] ss:$36 sps:$4 sm:$0xff]   ;;  %v3830_v57 = vld [vmem:[#allocation5 + $0x184] ss:$36 sps:$4 sm:$0xff]  }
  0x92   : > { %821 = vmatprep.subr.bf16.mxu0 %v3738_v26  ;;  %862 = vmatprep.subr.bf16.mxu1 %v3740_v27  ;;  %v3820_v54 = vld [vmem:[#allocation5 + $0x130] ss:$36 sps:$4 sm:$0xff]   ;;  %v3822_v55 = vld [vmem:[#allocation5 + $0x138] ss:$36 sps:$4 sm:$0xff]   ;;  %v3836_v59 = vld [vmem:[#allocation5 + $0x180] ss:$36 sps:$4 sm:$0xff]  }
  0x93   : > { %v3834_v58 = vld [vmem:[#allocation5 + $0x178] ss:$36 sps:$4 sm:$0xff]   ;;  %v3840_v60 = vld [vmem:[#allocation5 + $0x1c4] ss:$36 sps:$4 sm:$0xff]   ;;  %v3842_v61 = vld [vmem:[#allocation5 + $0x1cc] ss:$36 sps:$4 sm:$0xff]  }
  0x94   : > { %4369 = vst [vmem:[#allocation40_spill] sm:$0xff] %v3834_v58  ;;  %4370 = vst [vmem:[#allocation41_spill] sm:$0xff] %v3840_v60  ;;  %v3846_v62 = vld [vmem:[#allocation5 + $0x1c0] ss:$36 sps:$4 sm:$0xff]   ;;  %v3848_v63 = vld [vmem:[#allocation5 + $0x1c8] ss:$36 sps:$4 sm:$0xff]  }
  0x95   : > { %822 = vmatpush1.bf16.msra.mxu0 %v3742_v28  ;;  %863 = vmatpush1.bf16.msra.mxu1 %v3744_v29  ;;  %4371 = vst [vmem:[#allocation42_spill] sm:$0xff] %v3842_v61  ;;  %v3852_v0 = vld [vmem:[#allocation5 + $0x20c] ss:$36 sps:$4 sm:$0xff]   ;;  %v3854_v34 = vld [vmem:[#allocation5 + $0x214] ss:$36 sps:$4 sm:$0xff]  }
  0x96   : > { %823 = vmatprep.subr.bf16.mxu0 %v3748_v30  ;;  %864 = vmatprep.subr.bf16.mxu1 %v3752_v31  ;;  %4372 = vst [vmem:[#allocation43_spill] sm:$0xff] %v3852_v0 }
  0x99   : > { %824 = vmatpush1.bf16.msra.mxu0 %v3754_v32  ;;  %865 = vmatpush1.bf16.msra.mxu1 %v3756_v33 }
  0x9a   : > { %891 = vmatprep.subr.bf16.mxu0 %v3762_v35  ;;  %932 = vmatprep.subr.bf16.mxu1 %v3764_v36 }
  0x9c   : > { %842 = vmatmul.mubr.bf16.vlgmr.msra.gmra.mrb[0].mxu0 %v3766_v37  ;;  %883 = vmatmul.mubr.bf16.vlgmr.msra.gmra.mrb[0].mxu1 %v3766_v37 }
  0x9d   : > { %892 = vmatpush1.bf16.msra.mxu0 %v3768_v38  ;;  %933 = vmatpush1.bf16.msra.mxu1 %v3770_v39 }
  0x9e   : > { %893 = vmatprep.subr.bf16.mxu0 %v3774_v40  ;;  %934 = vmatprep.subr.bf16.mxu1 %v3778_v41 }
  0x9f   : > { %923 = vmatprep.mubr.bf16.mxu0 %v4293_v3  ;;  %964 = vmatprep.mubr.bf16.mxu1 %v4293_v3  ;;  %v3858_v3 = vld [vmem:[#allocation5 + $0x208] ss:$36 sps:$4 sm:$0xff]  }
  0xa1   : > { %894 = vmatpush1.bf16.msra.mxu0 %v3782_v42  ;;  %935 = vmatpush1.bf16.msra.mxu1 %v3786_v43 }
  0xa2   : > { %895 = vmatprep.subr.bf16.mxu0 %v3790_v44  ;;  %936 = vmatprep.subr.bf16.mxu1 %v3792_v45 }
  0xa5   : > { %896 = vmatpush1.bf16.msra.mxu0 %v3796_v46  ;;  %937 = vmatpush1.bf16.msra.mxu1 %v3798_v47 }
  0xa6   : > { %897 = vmatprep.subr.bf16.mxu0 %v3802_v48  ;;  %938 = vmatprep.subr.bf16.mxu1 %v3806_v49 }
  0xa9   : > { %898 = vmatpush1.bf16.msra.mxu0 %v3808_v50  ;;  %939 = vmatpush1.bf16.msra.mxu1 %v3810_v51 }
  0xaa   : > { %899 = vmatprep.subr.bf16.mxu0 %v3814_v52  ;;  %940 = vmatprep.subr.bf16.mxu1 %v3818_v53 }
  0xad   : > { %900 = vmatpush1.bf16.msra.mxu0 %v3820_v54  ;;  %941 = vmatpush1.bf16.msra.mxu1 %v3822_v55 }
  0xae   : > { %901 = vmatprep.subr.bf16.mxu0 %v3826_v56  ;;  %942 = vmatprep.subr.bf16.mxu1 %v3830_v57 }
  0xb1   : > { %902 = vmatpush1.bf16.msra.mxu0 %v3834_v58  ;;  %943 = vmatpush1.bf16.msra.mxu1 %v3836_v59  ;;  %v3860_v58 = vld [vmem:[#allocation5 + $0x210] ss:$36 sps:$4 sm:$0xff]  }
  0xb2   : > { %903 = vmatprep.subr.bf16.mxu0 %v3840_v60  ;;  %944 = vmatprep.subr.bf16.mxu1 %v3842_v61  ;;  %4373 = vst [vmem:[#allocation44_spill] sm:$0xff] %v3860_v58  ;;  %v3866_v61 = vld [vmem:[#allocation5 + $0x20] ss:$36 sps:$4 sm:$0xff]   ;;  %v4316_v60 = vmov 0.0  }
  0xb3   : > { %4374 = vst [vmem:[#allocation45_spill] sm:$0xff] %v3866_v61 }
  0xb5   : > { %904 = vmatpush1.bf16.msra.mxu0 %v3846_v62  ;;  %945 = vmatpush1.bf16.msra.mxu1 %v3848_v63 }
  0xb6   : > { %905 = vmatprep.subr.bf16.mxu0 %v3852_v0  ;;  %946 = vmatprep.subr.bf16.mxu1 %v3854_v34  ;;  %v3873_v0 = vld [vmem:[#allocation5 + $0x68] ss:$36 sps:$4 sm:$0xff]  }
  0xb7   : > { %4375 = vst [vmem:[#allocation46_spill] sm:$0xff] %v3873_v0 }
  0xb9   : > { %906 = vmatpush1.bf16.msra.mxu0 %v3858_v3  ;;  %947 = vmatpush1.bf16.msra.mxu1 %v3860_v58  ;;  %v4376_v58 = vmov 0  }
  0xba   : > { %2627 = vmatprep.subr.bf16.mxu0 %v4316_v60  ;;  %1146 = vmatprep.subr.bf16.mxu1 %v3666_v1  ;;  %v3882_v1 = vld [vmem:[#allocation5 + $0xb0] ss:$36 sps:$4 sm:$0xff]  }
  0xbb   : > { %4377 = vst [vmem:[#allocation47_spill] sm:$0xff] %v3882_v1 }
  0xbc   : > { %924 = vmatmul.mubr.bf16.vlgmr.msra.gmra.mrb[4].mxu0 %v3766_v37  ;;  %965 = vmatmul.mubr.bf16.vlgmr.msra.gmra.mrb[4].mxu1 %v3766_v37 }
  0xbd   : > { %2628 = vmatpush3.bf16.msra.mxu0 %v3866_v61  ;;  %2643 = vmatprep.mubr.msk.bf16.mxu0 %vm3445_vm0, %v4316_v60  ;;  %v3888_v61 = vld [vmem:[#allocation5 + $0xf8] ss:$36 sps:$4 sm:$0xff]  }
  0xbe   : > { %2629 = vmatprep.subr.bf16.mxu0 %v4316_v60  ;;  %1147 = vmatpush1.bf16.msra.mxu1 %v3673_v4  ;;  %4378 = vst [vmem:[#allocation48_spill] sm:$0xff] %v3888_v61 }
  0xbf   : > { %1148 = vmatprep.subr.bf16.mxu1 %v3678_v6  ;;  %1178 = vmatprep.mubr.bf16.mxu1 %v4376_v58 }
  0xc1   : > { %2630 = vmatpush3.bf16.msra.mxu0 %v3873_v0  ;;  %v3894_v0 = vld [vmem:[#allocation5 + $0x140] ss:$36 sps:$4 sm:$0xff]  }
  0xc2   : > { %2631 = vmatprep.subr.bf16.mxu0 %v4316_v60  ;;  %1149 = vmatpush1.bf16.msra.mxu1 %v3684_v8  ;;  %4379 = vst [vmem:[#allocation49_spill] sm:$0xff] %v3894_v0 }
  0xc3   : > { %1150 = vmatprep.subr.bf16.mxu1 %v3690_v10 }
  0xc5   : > { %2632 = vmatpush3.bf16.msra.mxu0 %v3882_v1  ;;  %v3900_v1 = vld [vmem:[#allocation5 + $0x188] ss:$36 sps:$4 sm:$0xff]  }
  0xc6   : > { %2633 = vmatprep.subr.bf16.mxu0 %v4316_v60  ;;  %1151 = vmatpush1.bf16.msra.mxu1 %v3694_v12 }
  0xc7   : > { %1152 = vmatprep.subr.bf16.mxu1 %v3700_v14 }
  0xc9   : > { %2634 = vmatpush3.bf16.msra.mxu0 %v3888_v61  ;;  %v3906_v61 = vld [vmem:[#allocation5 + $0x1d0] ss:$36 sps:$4 sm:$0xff]  }
  0xca   : > { %2635 = vmatprep.subr.bf16.mxu0 %v4316_v60  ;;  %1153 = vmatpush1.bf16.msra.mxu1 %v3706_v16 }
  0xcb   : > { %1154 = vmatprep.subr.bf16.mxu1 %v3712_v18 }
  0xcd   : > { %2636 = vmatpush3.bf16.msra.mxu0 %v3894_v0  ;;  %v3912_v0 = vld [vmem:[#allocation5 + $0x218] ss:$36 sps:$4 sm:$0xff]  }
  0xce   : > { %2637 = vmatprep.subr.bf16.mxu0 %v4316_v60  ;;  %1155 = vmatpush1.bf16.msra.mxu1 %v3718_v20  ;;  %4380 = vst [vmem:[#allocation50_spill] sm:$0xff] %v3912_v0 }
  0xcf   : > { %1156 = vmatprep.subr.bf16.mxu1 %v3724_v22 }
  0xd1   : > { %2638 = vmatpush3.bf16.msra.mxu0 %v3900_v1 }
  0xd2   : > { %2639 = vmatprep.subr.bf16.mxu0 %v4316_v60  ;;  %1157 = vmatpush1.bf16.msra.mxu1 %v3732_v24 }
  0xd3   : > { %1158 = vmatprep.subr.bf16.mxu1 %v3738_v26 }
  0xd5   : > { %2640 = vmatpush3.bf16.msra.mxu0 %v3906_v61 }
  0xd6   : > { %2641 = vmatprep.subr.bf16.mxu0 %v4316_v60  ;;  %1159 = vmatpush1.bf16.msra.mxu1 %v3742_v28 }
  0xd7   : > { %1160 = vmatprep.subr.bf16.mxu1 %v3748_v30 }
  0xd9   : > { %2642 = vmatpush3.bf16.msra.mxu0 %v3912_v0 }
  0xda   : > { %1187 = vmatprep.subr.bf16.mxu0 %v3668_v2  ;;  %1161 = vmatpush1.bf16.msra.mxu1 %v3754_v32 }
  0xdb   : > { %1228 = vmatprep.subr.bf16.mxu1 %v3762_v35 }
  0xdc   : > { %2644 = vmatmul.mubr.bf16.vlgmr.msra.gmra.mrb[8].mxu0 %v3766_v37  ;;  %v3446_v37 = vmov 1983009808  }
  0xdd   : > { %1188 = vmatpush1.bf16.msra.mxu0 %v3675_v5  ;;  %1219 = vmatprep.mubr.bf16.mxu0 %v4376_v58  ;;  %v1025_v60 = vunpack.c.l.s4 %v3446_v37 }
  0xde   : > { %1189 = vmatprep.subr.bf16.mxu0 %v3682_v7 }
  0xe1   : > { %1190 = vmatpush1.bf16.msra.mxu0 %v3687_v9 }
  0xe2   : > { %1191 = vmatprep.subr.bf16.mxu0 %v3692_v11 }
  0xe5   : > { %1192 = vmatpush1.bf16.msra.mxu0 %v3696_v13 }
  0xe6   : > { %1193 = vmatprep.subr.bf16.mxu0 %v3704_v15 }
  0xe9   : > { %1194 = vmatpush1.bf16.msra.mxu0 %v3710_v17  ;;  %v1027_v17 = vlaneseq }
  0xea   : > { %1195 = vmatprep.subr.bf16.mxu0 %v3716_v19  ;;  %v1026_v19 = vunpack.c.0.s8 %v1025_v60  ;;  %v437_v60 = vld [vmem:[%s3655_s19] sm:$0xff] }
  0xed   : > { %1196 = vmatpush1.bf16.msra.mxu0 %v3720_v21  ;;  %v1028_v21 = vshrl.u32 %v1027_v17, 7 }
  0xee   : > { %1197 = vmatprep.subr.bf16.mxu0 %v3728_v23 }
  0xef   : > { %v3939_v13 = vsub.s32 %v1026_v19, %v1028_v21 }
  0xf1   : > { %1198 = vmatpush1.bf16.msra.mxu0 %v3734_v25 }
  0xf2   : > { %1199 = vmatprep.subr.bf16.mxu0 %v3740_v27 }
  0xf5   : > { %1200 = vmatpush1.bf16.msra.mxu0 %v3744_v29 }
  0xf6   : > { %1201 = vmatprep.subr.bf16.mxu0 %v3752_v31 }
  0xf9   : > { %1202 = vmatpush1.bf16.msra.mxu0 %v3756_v33 }
  0xfa   : > { %1269 = vmatprep.subr.bf16.mxu0 %v3764_v36 }
 0x16f   : > { %v843_v15 = vpop.f32.mrb[0].mxu0  ;;  %v884_v23 = vpop.f32.mrb[0].mxu1 }
 0x170   : > { %v845_v25 = vpop.f32.mrb[1].mxu0  ;;  %v886_v27 = vpop.f32.mrb[1].mxu1 }
 0x171   : > { %v1022_v11 = vcombine.low %v843_v15, %v845_v25  ;;  %v1023_v29 = vcombine.low %v884_v23, %v886_v27  ;;  %v847_v9 = vpop.f32.mrb[2].mxu0  ;;  %v888_v31 = vpop.f32.mrb[2].mxu1 }
 0x172   : > { %v848_v7 = vpop.f32.mrb[3].mxu0  ;;  %v889_v33 = vpop.f32.mrb[3].mxu1 }
 0x173   : > { %v1030_v36 = vrot.slane %v1022_v11, %v3939_v13  ;;  %v1037_v37 = vrot.slane %v1023_v29, %v3939_v13  ;;  %v438_v29 = vld [vmem:[%s3655_s19 + $0x8] sm:$0xff] }
 0x175   : > { %v1038_v5 = vcombine.low %v1030_v36, %v1037_v37 }
 0x177   : > { %v1066_v17 = vadd.f32 %v1038_v5, %v437_v60 }
 0x179   : > { %v1077_v2 = vrot.slane %v1066_v17, 2  ;;  %v2525_v36 = vmul.f32 -1.442695, %v1066_v17 }
 0x17b   : > { %v2526_v31 = vmul.f32 -1.442695, %v1077_v2 }
 0x17d   : > { %2951 = vpow2.f32 %v2526_v31 }
 0x17e   : > { %2953 = vpow2.f32 %v2525_v36 }
 0x18f   : > { %v925_v35 = vpop.f32.mrb[4].mxu0  ;;  %v966_v32 = vpop.f32.mrb[4].mxu1 }
 0x190   : > { %v927_v19 = vpop.f32.mrb[5].mxu0  ;;  %v968_v21 = vpop.f32.mrb[5].mxu1 }
 0x191   : > { %v1039_v0 = vcombine.low %v925_v35, %v927_v19  ;;  %v1040_v15 = vcombine.low %v966_v32, %v968_v21  ;;  %v929_v23 = vpop.f32.mrb[6].mxu0  ;;  %v970_v9 = vpop.f32.mrb[6].mxu1  ;;  %v1085_v19 = vrot.slane %v1066_v17, 4 }
 0x192   : > { %v930_v25 = vpop.f32.mrb[7].mxu0  ;;  %v971_v7 = vpop.f32.mrb[7].mxu1  ;;  %v1090_v9 = vrot.slane %v1066_v17, 6 }
 0x193   : > { %v1047_v27 = vrot.slane %v1039_v0, %v3939_v13  ;;  %v1054_v11 = vrot.slane %v1040_v15, %v3939_v13  ;;  %v2952_v32 = vpop.eup %2951 }
 0x194   : > { %v2954_v35 = vpop.eup %2953  ;;  %v1082_v23 = vadd.f32 1.0, %v2952_v32 }
 0x195   : > { %v1055_v33 = vcombine.low %v1047_v27, %v1054_v11  ;;  %v1072_v15 = vadd.f32 1.0, %v2954_v35  ;;  %v2527_v11 = vmul.f32 -1.442695, %v1090_v9 }
 0x197   : > { %v1067_v5 = vadd.f32 %v1055_v33, %v438_v29  ;;  %v439_v29 = vld [vmem:[%s3655_s19 + $0x10] sm:$0x3] }
 0x199   : > { %v2528_v37 = vmul.f32 -1.442695, %v1067_v5  ;;  %v1108_v60 = vrot.slane %v1067_v5, 2  ;;  %v1116_v25 = vrot.slane %v1067_v5, 4  ;;  %v1121_v7 = vrot.slane %v1067_v5, 6 }
 0x19b   : > { %v2529_v30 = vmul.f32 -1.442695, %v1108_v60  ;;  %2955 = vpow2.f32 %v2528_v37 }
 0x19d   : > { %2957 = vpow2.f32 %v2529_v30  ;;  %v2530_v30 = vmul.f32 -1.442695, %v1121_v7 }
 0x19e   : > { %2959 = vtanh.f32 %v1085_v19 }
 0x19f   : > { %2961 = vrcp.f32 %v1082_v23  ;;  %v435_v23 = vld [vmem:[#allocation8] sm:$0x3] }
 0x1a0   : > { %2963 = vrcp.f32 %v1072_v15 }
 0x1a5   : > { %v2956_v21 = vpop.eup %2955 }
 0x1a6   : > { %v1103_v27 = vadd.f32 1.0, %v2956_v21 }
 0x1a7   : > { %v2958_v0 = vpop.eup %2957 }
 0x1a8   : > { %v1113_v2 = vadd.f32 1.0, %v2958_v0  ;;  %v2960_v32 = vpop.eup %2959 }
 0x1a9   : > { %v2962_v5 = vpop.eup %2961 }
 0x1aa   : > { %2965 = vrcp.f32 %v1113_v2  ;;  %v2964_v19 = vpop.eup %2963  ;;  %v1088_v15 = vmul.f32 %v2962_v5, %v2960_v32  ;;  %v436_v2 = vld [vmem:[#allocation9] sm:$0x3] }
 0x1ab   : > { %2967 = vtanh.f32 %v1116_v25  ;;  %v1075_v7 = vmul.f32 %v2964_v19, %v435_v23 }
 0x1ac   : > { %2969 = vrcp.f32 %v1103_v27 }
 0x1ad   : > { %2971 = vpow2.f32 %v2527_v11 }
 0x1ae   : > { %2973 = vpow2.f32 %v2530_v30 }
 0x1af   : > { %v1007_v31 = vpop.f32.mrb[8].mxu0 }
 0x1b0   : > { %v1062_v33 = vrot.slane %v1007_v31, %v3939_v13  ;;  %v2645_v36 = vpop.f32.mrb[9].mxu0  ;;  %v3949_v31 = vadd.f32 %v1088_v15, %v1075_v7  ;;  %v4381_v7 = vld [vmem:[#allocation40_spill] sm:$0xff] }
 0x1b1   : > { %v1010_v17 = vpop.f32.mrb[10].mxu0 }
 0x1b2   : > { %v1068_v37 = vadd.f32 %v1062_v33, %v439_v29  ;;  %v2646_v60 = vpop.f32.mrb[11].mxu0 }
 0x1b4   : > { %v2531_v35 = vmul.f32 -1.442695, %v1068_v37  ;;  %v2966_v21 = vpop.eup %2965 }
 0x1b5   : > { %v2968_v0 = vpop.eup %2967 }
 0x1b6   : > { %2975 = vpow2.f32 %v2531_v35  ;;  %v2970_v9 = vpop.eup %2969  ;;  %v1119_v27 = vmul.f32 %v2968_v0, %v2966_v21 }
 0x1b7   : > { %v2972_v25 = vpop.eup %2971  ;;  %v1106_v30 = vmul.f32 %v2970_v9, %v436_v2  ;;  %2977 = vtanh.f32 %v3949_v31 }
 0x1b8   : > { %v2974_v11 = vpop.eup %2973  ;;  %v1095_v29 = vadd.f32 1.0, %v2972_v25 }
 0x1b9   : > { %v3951_v33 = vadd.f32 %v1119_v27, %v1106_v30  ;;  %v1126_v36 = vadd.f32 1.0, %v2974_v11  ;;  %v4382_v27 = vld [vmem:[#allocation41_spill] sm:$0xff]  ;;  %v4383_v11 = vld [vmem:[#allocation42_spill] sm:$0xff]  ;;  %v4384_v30 = vld [vmem:[#allocation43_spill] sm:$0xff] }
 0x1ba   : > { %2979 = vrcp.f32 %v1095_v29  ;;  %v4385_v29 = vld [vmem:[#allocation44_spill] sm:$0xff] }
 0x1bb   : > { %2981 = vtanh.f32 %v3951_v33 }
 0x1bc   : > { %2983 = vrcp.f32 %v1126_v36  ;;  %v4386_v36 = vmov 0.0  }
 0x1c0   : > { %v2976_v17 = vpop.eup %2975 }
 0x1c1   : > { %v1134_v37 = vadd.f32 1.0, %v2976_v17  ;;  %v2978_v60 = vpop.eup %2977  ;;  %v4387_v17 = vld [vmem:[#allocation19_spill] sm:$0xff] }
 0x1c3   : > { %2985 = vrcp.f32 %v1134_v37  ;;  %v4388_v37 = vld [vmem:[#allocation45_spill] sm:$0xff] }
 0x1c4   : > { %v2980_v32 = vpop.eup %2979 }
 0x1c5   : > { %v2982_v5 = vpop.eup %2981  ;;  %v1099_v19 = vmul.f32 %v2980_v32, %v2978_v60  ;;  %v4389_v60 = vld [vmem:[#allocation46_spill] sm:$0xff]  ;;  %v4390_v32 = vld [vmem:[#allocation47_spill] sm:$0xff] }
 0x1c6   : > { %v2984_v35 = vpop.eup %2983 }
 0x1c7   : > { %v1130_v23 = vmul.f32 %v2984_v35, %v2982_v5  ;;  %v4404_v5 = vld [vmem:[#allocation27_spill] sm:$0xff]  ;;  %v4405_v35 = vld [vmem:[#allocation28_spill] sm:$0xff] }
 0x1cd   : > { %v2986_v21 = vpop.eup %2985 }
 0x1ce   : > { %v1137_v0 = vmul.f32 %v2986_v21, %v1099_v19  ;;  %v1138_v15 = vsub.f32 1.0, %v2986_v21  ;;  %v4406_v19 = vld [vmem:[#allocation29_spill] sm:$0xff]  ;;  %v4407_v21 = vld [vmem:[#allocation30_spill] sm:$0xff] }
 0x1d0   : > { %v1139_v9 = vmul.f32 %v1138_v15, %v1130_v23  ;;  %v4408_v23 = vld [vmem:[#allocation31_spill] sm:$0xff]  ;;  %v4410_v15 = vld [vmem:[#allocation33_spill] sm:$0xff] }
 0x1d2   : > { %v1140_v2 = vadd.f32 %v1139_v9, %v1137_v0  ;;  %v4409_v0 = vld [vmem:[#allocation32_spill] sm:$0xff]  ;;  %v4411_v9 = vld [vmem:[#allocation35_spill] sm:$0xff] }
 0x1d4   : > { %v3955_v25 = vpack.c.bf16 %v1140_v2, %v1140_v2  ;;  %v4412_v2 = vld [vmem:[#allocation37_spill] sm:$0xff] }
 0x1d6   : > { %1179 = vmatmul.mubr.bf16.vlgmr.msra.gmra.mrb[8].mxu1 %v3955_v25  ;;  %1220 = vmatmul.mubr.bf16.vlgmr.msra.gmra.mrb[12].mxu0 %v3955_v25 }
 0x1d7   : > { %1229 = vmatpush1.bf16.msra.mxu1 %v3768_v38  ;;  %1270 = vmatpush1.bf16.msra.mxu0 %v3770_v39 }
 0x1d8   : > { %1230 = vmatprep.subr.bf16.mxu1 %v3774_v40  ;;  %1271 = vmatprep.subr.bf16.mxu0 %v3778_v41 }
 0x1d9   : > { %1260 = vmatprep.mubr.bf16.mxu1 %v4376_v58  ;;  %1301 = vmatprep.mubr.bf16.mxu0 %v4376_v58 }
 0x1db   : > { %1231 = vmatpush1.bf16.msra.mxu1 %v3782_v42  ;;  %1272 = vmatpush1.bf16.msra.mxu0 %v3786_v43 }
 0x1dc   : > { %1232 = vmatprep.subr.bf16.mxu1 %v3790_v44  ;;  %1273 = vmatprep.subr.bf16.mxu0 %v3792_v45 }
 0x1df   : > { %1233 = vmatpush1.bf16.msra.mxu1 %v3796_v46  ;;  %1274 = vmatpush1.bf16.msra.mxu0 %v3798_v47 }
 0x1e0   : > { %1234 = vmatprep.subr.bf16.mxu1 %v3802_v48  ;;  %1275 = vmatprep.subr.bf16.mxu0 %v3806_v49 }
 0x1e3   : > { %1235 = vmatpush1.bf16.msra.mxu1 %v3808_v50  ;;  %1276 = vmatpush1.bf16.msra.mxu0 %v3810_v51 }
 0x1e4   : > { %1236 = vmatprep.subr.bf16.mxu1 %v3814_v52  ;;  %1277 = vmatprep.subr.bf16.mxu0 %v3818_v53 }
 0x1e7   : > { %1237 = vmatpush1.bf16.msra.mxu1 %v3820_v54  ;;  %1278 = vmatpush1.bf16.msra.mxu0 %v3822_v55 }
 0x1e8   : > { %1238 = vmatprep.subr.bf16.mxu1 %v3826_v56  ;;  %1279 = vmatprep.subr.bf16.mxu0 %v3830_v57 }
 0x1eb   : > { %1239 = vmatpush1.bf16.msra.mxu1 %v4381_v7  ;;  %1280 = vmatpush1.bf16.msra.mxu0 %v3836_v59 }
 0x1ec   : > { %1240 = vmatprep.subr.bf16.mxu1 %v4382_v27  ;;  %1281 = vmatprep.subr.bf16.mxu0 %v4383_v11 }
 0x1ef   : > { %1241 = vmatpush1.bf16.msra.mxu1 %v3846_v62  ;;  %1282 = vmatpush1.bf16.msra.mxu0 %v3848_v63 }
 0x1f0   : > { %1242 = vmatprep.subr.bf16.mxu1 %v4384_v30  ;;  %1283 = vmatprep.subr.bf16.mxu0 %v3854_v34 }
 0x1f3   : > { %1243 = vmatpush1.bf16.msra.mxu1 %v3858_v3  ;;  %1284 = vmatpush1.bf16.msra.mxu0 %v4385_v29 }
 0x1f4   : > { %2647 = vmatprep.subr.bf16.mxu1 %v4386_v36  ;;  %1483 = vmatprep.subr.bf16.mxu0 %v4387_v17 }
 0x1f6   : > { %1261 = vmatmul.mubr.bf16.vlgmr.msra.gmra.mrb[12].mxu1 %v3955_v25  ;;  %1302 = vmatmul.mubr.bf16.vlgmr.msra.gmra.mrb[16].mxu0 %v3955_v25 }
 0x1f7   : > { %2648 = vmatpush3.bf16.msra.mxu1 %v4388_v37  ;;  %2663 = vmatprep.mubr.msk.bf16.mxu1 %vm3445_vm0, %v4386_v36 }
 0x1f8   : > { %2649 = vmatprep.subr.bf16.mxu1 %v4386_v36  ;;  %1484 = vmatpush1.bf16.msra.mxu0 %v3673_v4  ;;  %v4391_v4 = vld [vmem:[#allocation48_spill] sm:$0xff] }
 0x1f9   : > { %1485 = vmatprep.subr.bf16.mxu0 %v3678_v6  ;;  %1515 = vmatprep.mubr.bf16.mxu0 %v4376_v58  ;;  %v4392_v6 = vld [vmem:[#allocation49_spill] sm:$0xff] }
 0x1fb   : > { %2650 = vmatpush3.bf16.msra.mxu1 %v4389_v60 }
 0x1fc   : > { %2651 = vmatprep.subr.bf16.mxu1 %v4386_v36  ;;  %1486 = vmatpush1.bf16.msra.mxu0 %v3684_v8  ;;  %v4393_v8 = vld [vmem:[#allocation34_spill] sm:$0xff] }
 0x1fd   : > { %1487 = vmatprep.subr.bf16.mxu0 %v3690_v10  ;;  %v4394_v10 = vld [vmem:[#allocation50_spill] sm:$0xff] }
 0x1ff   : > { %2652 = vmatpush3.bf16.msra.mxu1 %v4390_v32 }
 0x200   : > { %2653 = vmatprep.subr.bf16.mxu1 %v4386_v36  ;;  %1488 = vmatpush1.bf16.msra.mxu0 %v3694_v12  ;;  %v4395_v12 = vld [vmem:[#allocation20_spill] sm:$0xff] }
 0x201   : > { %1489 = vmatprep.subr.bf16.mxu0 %v3700_v14  ;;  %v4396_v14 = vld [vmem:[#allocation36_spill] sm:$0xff] }
 0x203   : > { %2654 = vmatpush3.bf16.msra.mxu1 %v4391_v4 }
 0x204   : > { %2655 = vmatprep.subr.bf16.mxu1 %v4386_v36  ;;  %1490 = vmatpush1.bf16.msra.mxu0 %v3706_v16  ;;  %v4397_v16 = vld [vmem:[#allocation38_spill] sm:$0xff] }
 0x205   : > { %1491 = vmatprep.subr.bf16.mxu0 %v3712_v18  ;;  %v4398_v18 = vld [vmem:[#allocation21_spill] sm:$0xff] }
 0x207   : > { %2656 = vmatpush3.bf16.msra.mxu1 %v4392_v6 }
 0x208   : > { %2657 = vmatprep.subr.bf16.mxu1 %v4386_v36  ;;  %1492 = vmatpush1.bf16.msra.mxu0 %v3718_v20  ;;  %v4399_v20 = vld [vmem:[#allocation22_spill] sm:$0xff] }
 0x209   : > { %1493 = vmatprep.subr.bf16.mxu0 %v3724_v22  ;;  %v4400_v22 = vld [vmem:[#allocation23_spill] sm:$0xff] }
 0x20b   : > { %2658 = vmatpush3.bf16.msra.mxu1 %v3900_v1 }
 0x20c   : > { %2659 = vmatprep.subr.bf16.mxu1 %v4386_v36  ;;  %1494 = vmatpush1.bf16.msra.mxu0 %v3732_v24  ;;  %v4401_v24 = vld [vmem:[#allocation24_spill] sm:$0xff] }
 0x20d   : > { %1495 = vmatprep.subr.bf16.mxu0 %v3738_v26  ;;  %v4402_v26 = vld [vmem:[#allocation25_spill] sm:$0xff] }
 0x20f   : > { %2660 = vmatpush3.bf16.msra.mxu1 %v3906_v61 }
 0x210   : > { %2661 = vmatprep.subr.bf16.mxu1 %v4386_v36  ;;  %1496 = vmatpush1.bf16.msra.mxu0 %v3742_v28  ;;  %v4403_v28 = vld [vmem:[#allocation26_spill] sm:$0xff] }
 0x211   : > { %1497 = vmatprep.subr.bf16.mxu0 %v4393_v8 }
 0x213   : > { %2662 = vmatpush3.bf16.msra.mxu1 %v4394_v10 }
 0x214   : > { %1524 = vmatprep.subr.bf16.mxu1 %v4395_v12  ;;  %1498 = vmatpush1.bf16.msra.mxu0 %v4396_v14 }
 0x215   : > { %1565 = vmatprep.subr.bf16.mxu0 %v4397_v16 }
 0x216   : > { %2664 = vmatmul.mubr.bf16.vlgmr.msra.gmra.mrb[16].mxu1 %v3955_v25  ;;  %v4413_v25 = vld [vmem:[#allocation39_spill] sm:$0xff] }
 0x217   : > { %1525 = vmatpush1.bf16.msra.mxu1 %v4398_v18  ;;  %1556 = vmatprep.mubr.bf16.mxu1 %v4376_v58 }
 0x218   : > { %1526 = vmatprep.subr.bf16.mxu1 %v4399_v20 }
 0x21b   : > { %1527 = vmatpush1.bf16.msra.mxu1 %v4400_v22 }
 0x21c   : > { %1528 = vmatprep.subr.bf16.mxu1 %v4401_v24 }
 0x21f   : > { %1529 = vmatpush1.bf16.msra.mxu1 %v4402_v26 }
 0x220   : > { %1530 = vmatprep.subr.bf16.mxu1 %v4403_v28 }
 0x223   : > { %1531 = vmatpush1.bf16.msra.mxu1 %v4404_v5 }
 0x224   : > { %1532 = vmatprep.subr.bf16.mxu1 %v4405_v35 }
 0x227   : > { %1533 = vmatpush1.bf16.msra.mxu1 %v4406_v19  ;;  %v2532_v19 = vld [vmem:[%s3655_s19 + $0x12] sm:$0xff] }
 0x228   : > { %1534 = vmatprep.subr.bf16.mxu1 %v4407_v21 }
 0x22b   : > { %1535 = vmatpush1.bf16.msra.mxu1 %v4408_v23 }
 0x22c   : > { %1536 = vmatprep.subr.bf16.mxu1 %v4409_v0 }
 0x22f   : > { %1537 = vmatpush1.bf16.msra.mxu1 %v4410_v15 }
 0x230   : > { %1538 = vmatprep.subr.bf16.mxu1 %v4411_v9 }
 0x233   : > { %1539 = vmatpush1.bf16.msra.mxu1 %v4412_v2 }
 0x234   : > { %1606 = vmatprep.subr.bf16.mxu1 %v4413_v25 }
 0x2a9   : > { %v1180_v17 = vpop.f32.mrb[8].mxu1  ;;  %v1221_v8 = vpop.f32.mrb[12].mxu0 }
 0x2aa   : > { %v1182_v12 = vpop.f32.mrb[9].mxu1  ;;  %v1223_v14 = vpop.f32.mrb[13].mxu0 }
 0x2ab   : > { %v1359_v16 = vcombine.low %v1180_v17, %v1182_v12  ;;  %v1360_v18 = vcombine.low %v1221_v8, %v1223_v14  ;;  %v1184_v20 = vpop.f32.mrb[10].mxu1  ;;  %v1225_v22 = vpop.f32.mrb[14].mxu0 }
 0x2ac   : > { %v1185_v24 = vpop.f32.mrb[11].mxu1  ;;  %v1226_v26 = vpop.f32.mrb[15].mxu0 }
 0x2ad   : > { %v1367_v28 = vrot.slane %v1359_v16, %v3939_v13  ;;  %v1374_v5 = vrot.slane %v1360_v18, %v3939_v13  ;;  %v2533_v18 = vld [vmem:[%s3655_s19 + $0x1a] sm:$0xff] }
 0x2af   : > { %v1375_v35 = vcombine.low %v1367_v28, %v1374_v5 }
 0x2b1   : > { %v1403_v21 = vadd.f32 %v2532_v19, %v1375_v35 }
 0x2b3   : > { %v1414_v2 = vrot.slane %v1403_v21, 2  ;;  %v2535_v28 = vmul.f32 -1.442695, %v1403_v21 }
 0x2b5   : > { %v2536_v24 = vmul.f32 -1.442695, %v1414_v2 }
 0x2b7   : > { %2987 = vpow2.f32 %v2536_v24 }
 0x2b8   : > { %2989 = vpow2.f32 %v2535_v28 }
 0x2c9   : > { %v1262_v23 = vpop.f32.mrb[12].mxu1  ;;  %v1303_v0 = vpop.f32.mrb[16].mxu0 }
 0x2ca   : > { %v1264_v15 = vpop.f32.mrb[13].mxu1  ;;  %v1305_v9 = vpop.f32.mrb[17].mxu0 }
 0x2cb   : > { %v1376_v25 = vcombine.low %v1262_v23, %v1264_v15  ;;  %v1377_v17 = vcombine.low %v1303_v0, %v1305_v9  ;;  %v1266_v8 = vpop.f32.mrb[14].mxu1  ;;  %v1307_v12 = vpop.f32.mrb[18].mxu0  ;;  %v1422_v15 = vrot.slane %v1403_v21, 4 }
 0x2cc   : > { %v1267_v14 = vpop.f32.mrb[15].mxu1  ;;  %v1308_v20 = vpop.f32.mrb[19].mxu0  ;;  %v1427_v12 = vrot.slane %v1403_v21, 6 }
 0x2cd   : > { %v1384_v22 = vrot.slane %v1376_v25, %v3939_v13  ;;  %v1391_v16 = vrot.slane %v1377_v17, %v3939_v13  ;;  %v2988_v23 = vpop.eup %2987 }
 0x2ce   : > { %v2990_v0 = vpop.eup %2989  ;;  %v1419_v8 = vadd.f32 1.0, %v2988_v23 }
 0x2cf   : > { %v1392_v26 = vcombine.low %v1384_v22, %v1391_v16  ;;  %v1409_v17 = vadd.f32 1.0, %v2990_v0  ;;  %v2537_v16 = vmul.f32 -1.442695, %v1427_v12 }
 0x2d1   : > { %v1404_v5 = vadd.f32 %v2533_v18, %v1392_v26  ;;  %v2534_v18 = vld [vmem:[%s3655_s19 + $0x22] sm:$0x3] }
 0x2d3   : > { %v2538_v35 = vmul.f32 -1.442695, %v1404_v5  ;;  %v1445_v19 = vrot.slane %v1404_v5, 2  ;;  %v1453_v14 = vrot.slane %v1404_v5, 4  ;;  %v1458_v20 = vrot.slane %v1404_v5, 6 }
 0x2d5   : > { %v2539_v10 = vmul.f32 -1.442695, %v1445_v19  ;;  %2991 = vpow2.f32 %v2538_v35 }
 0x2d7   : > { %2993 = vpow2.f32 %v2539_v10  ;;  %v2540_v10 = vmul.f32 -1.442695, %v1458_v20 }
 0x2d8   : > { %2995 = vtanh.f32 %v1422_v15 }
 0x2d9   : > { %2997 = vrcp.f32 %v1419_v8 }
 0x2da   : > { %2999 = vrcp.f32 %v1409_v17 }
 0x2df   : > { %v2992_v9 = vpop.eup %2991 }
 0x2e0   : > { %v1440_v22 = vadd.f32 1.0, %v2992_v9 }
 0x2e1   : > { %v2994_v25 = vpop.eup %2993 }
 0x2e2   : > { %v1450_v2 = vadd.f32 1.0, %v2994_v25  ;;  %v2996_v23 = vpop.eup %2995 }
 0x2e3   : > { %v2998_v5 = vpop.eup %2997 }
 0x2e4   : > { %3001 = vrcp.f32 %v1450_v2  ;;  %v3000_v15 = vpop.eup %2999  ;;  %v1425_v25 = vmul.f32 %v2998_v5, %v2996_v23 }
 0x2e5   : > { %3003 = vtanh.f32 %v1453_v14  ;;  %v1412_v2 = vmul.f32 %v3000_v15, %v3949_v31 }
 0x2e6   : > { %3005 = vrcp.f32 %v1440_v22 }
 0x2e7   : > { %3007 = vpow2.f32 %v2537_v16  ;;  %v4057_v22 = vadd.f32 %v1425_v25, %v1412_v2 }
 0x2e8   : > { %3009 = vpow2.f32 %v2540_v10 }
 0x2e9   : > { %v1344_v24 = vpop.f32.mrb[16].mxu1 }
 0x2ea   : > { %v1399_v26 = vrot.slane %v1344_v24, %v3939_v13  ;;  %v2665_v28 = vpop.f32.mrb[17].mxu1 }
 0x2eb   : > { %v1347_v21 = vpop.f32.mrb[18].mxu1 }
 0x2ec   : > { %v1405_v35 = vadd.f32 %v2534_v18, %v1399_v26  ;;  %v2666_v19 = vpop.f32.mrb[19].mxu1 }
 0x2ee   : > { %v2541_v0 = vmul.f32 -1.442695, %v1405_v35  ;;  %v3002_v9 = vpop.eup %3001 }
 0x2ef   : > { %v3004_v8 = vpop.eup %3003 }
 0x2f0   : > { %3011 = vpow2.f32 %v2541_v0  ;;  %v3006_v17 = vpop.eup %3005  ;;  %v1456_v14 = vmul.f32 %v3004_v8, %v3002_v9 }
 0x2f1   : > { %v3008_v12 = vpop.eup %3007  ;;  %v1443_v16 = vmul.f32 %v3006_v17, %v3951_v33  ;;  %3013 = vtanh.f32 %v4057_v22 }
 0x2f2   : > { %v3010_v20 = vpop.eup %3009  ;;  %v1432_v10 = vadd.f32 1.0, %v3008_v12 }
 0x2f3   : > { %v4060_v18 = vadd.f32 %v1456_v14, %v1443_v16  ;;  %v1463_v24 = vadd.f32 1.0, %v3010_v20 }
 0x2f4   : > { %3015 = vrcp.f32 %v1432_v10 }
 0x2f5   : > { %3017 = vtanh.f32 %v4060_v18 }
 0x2f6   : > { %3019 = vrcp.f32 %v1463_v24 }
 0x2fa   : > { %v3012_v26 = vpop.eup %3011 }
 0x2fb   : > { %v1471_v28 = vadd.f32 1.0, %v3012_v26  ;;  %v3014_v31 = vpop.eup %3013 }
 0x2fd   : > { %3021 = vrcp.f32 %v1471_v28 }
 0x2fe   : > { %v3016_v21 = vpop.eup %3015 }
 0x2ff   : > { %v3018_v35 = vpop.eup %3017  ;;  %v1436_v23 = vmul.f32 %v3016_v21, %v3014_v31  ;;  %v2542_v21 = vld [vmem:[%s3655_s19 + $0x24] sm:$0xff] }
 0x300   : > { %v3020_v19 = vpop.eup %3019 }
 0x301   : > { %v1467_v33 = vmul.f32 %v3020_v19, %v3018_v35 }
 0x307   : > { %v3022_v5 = vpop.eup %3021 }
 0x308   : > { %v1474_v0 = vmul.f32 %v3022_v5, %v1436_v23  ;;  %v1475_v15 = vsub.f32 1.0, %v3022_v5 }
 0x30a   : > { %v1476_v9 = vmul.f32 %v1475_v15, %v1467_v33 }
 0x30c   : > { %v1477_v8 = vadd.f32 %v1476_v9, %v1474_v0 }
 0x30e   : > { %v4064_v25 = vpack.c.bf16 %v1477_v8, %v1477_v8 }
 0x310   : > { %1516 = vmatmul.mubr.bf16.vlgmr.msra.gmra.mrb[20].mxu0 %v4064_v25  ;;  %1557 = vmatmul.mubr.bf16.vlgmr.msra.gmra.mrb[20].mxu1 %v4064_v25 }
 0x311   : > { %1566 = vmatpush1.bf16.msra.mxu0 %v3768_v38  ;;  %1607 = vmatpush1.bf16.msra.mxu1 %v3770_v39  ;;  %v3095_v38 = vld [vmem:[#allocation5 + $0x4] ss:$36 sps:$4 sm:$0xff]  }
 0x312   : > { %1567 = vmatprep.subr.bf16.mxu0 %v3774_v40  ;;  %1608 = vmatprep.subr.bf16.mxu1 %v3778_v41  ;;  %v3096_v39 = vld [vmem:[#allocation5] ss:$36 sps:$4 sm:$0xff]   ;;  %v3098_v40 = vld [vmem:[#allocation5 + $0x48] ss:$36 sps:$4 sm:$0xff]   ;;  %v3099_v41 = vld [vmem:[#allocation5 + $0x94] ss:$36 sps:$4 sm:$0xff]  }
 0x313   : > { %1597 = vmatprep.mubr.bf16.mxu0 %v4376_v58  ;;  %1638 = vmatprep.mubr.bf16.mxu1 %v4376_v58 }
 0x315   : > { %1568 = vmatpush1.bf16.msra.mxu0 %v3782_v42  ;;  %1609 = vmatpush1.bf16.msra.mxu1 %v3786_v43  ;;  %v3100_v42 = vld [vmem:[#allocation5 + $0x90] ss:$36 sps:$4 sm:$0xff]   ;;  %v3101_v43 = vld [vmem:[#allocation5 + $0xdc] ss:$36 sps:$4 sm:$0xff]  }
 0x316   : > { %1569 = vmatprep.subr.bf16.mxu0 %v3790_v44  ;;  %1610 = vmatprep.subr.bf16.mxu1 %v3792_v45  ;;  %v3102_v44 = vld [vmem:[#allocation5 + $0xd8] ss:$36 sps:$4 sm:$0xff]   ;;  %v3103_v45 = vld [vmem:[#allocation5 + $0x124] ss:$36 sps:$4 sm:$0xff]  }
 0x319   : > { %1570 = vmatpush1.bf16.msra.mxu0 %v3796_v46  ;;  %1611 = vmatpush1.bf16.msra.mxu1 %v3798_v47  ;;  %v3104_v46 = vld [vmem:[#allocation5 + $0x120] ss:$36 sps:$4 sm:$0xff]   ;;  %v3105_v47 = vld [vmem:[#allocation5 + $0x16c] ss:$36 sps:$4 sm:$0xff]  }
 0x31a   : > { %1571 = vmatprep.subr.bf16.mxu0 %v3802_v48  ;;  %1612 = vmatprep.subr.bf16.mxu1 %v3806_v49  ;;  %v3106_v48 = vld [vmem:[#allocation5 + $0x168] ss:$36 sps:$4 sm:$0xff]   ;;  %v3107_v49 = vld [vmem:[#allocation5 + $0x1b4] ss:$36 sps:$4 sm:$0xff]  }
 0x31d   : > { %1572 = vmatpush1.bf16.msra.mxu0 %v3808_v50  ;;  %1613 = vmatpush1.bf16.msra.mxu1 %v3810_v51  ;;  %v3108_v50 = vld [vmem:[#allocation5 + $0x1b0] ss:$36 sps:$4 sm:$0xff]   ;;  %v3109_v51 = vld [vmem:[#allocation5 + $0x1fc] ss:$36 sps:$4 sm:$0xff]  }
 0x31e   : > { %1573 = vmatprep.subr.bf16.mxu0 %v3814_v52  ;;  %1614 = vmatprep.subr.bf16.mxu1 %v3818_v53  ;;  %v4414_v52 = vld [vmem:[#allocation50_spill] sm:$0xff]  ;;  %v3110_v53 = vld [vmem:[#allocation5 + $0xc] ss:$36 sps:$4 sm:$0xff]  }
 0x321   : > { %1574 = vmatpush1.bf16.msra.mxu0 %v3820_v54  ;;  %1615 = vmatpush1.bf16.msra.mxu1 %v3822_v55  ;;  %v3111_v54 = vld [vmem:[#allocation5 + $0x1f8] ss:$36 sps:$4 sm:$0xff]   ;;  %v3113_v55 = vld [vmem:[#allocation5 + $0x8] ss:$36 sps:$4 sm:$0xff]  }
 0x322   : > { %1575 = vmatprep.subr.bf16.mxu0 %v3826_v56  ;;  %1616 = vmatprep.subr.bf16.mxu1 %v3830_v57  ;;  %v3114_v56 = vld [vmem:[#allocation5 + $0x54] ss:$36 sps:$4 sm:$0xff]  }
 0x323   : > { %v3115_v57 = vld [vmem:[#allocation5 + $0x50] ss:$36 sps:$4 sm:$0xff]  }
 0x325   : > { %1576 = vmatpush1.bf16.msra.mxu0 %v4381_v7  ;;  %1617 = vmatpush1.bf16.msra.mxu1 %v3836_v59  ;;  %v3116_v59 = vld [vmem:[#allocation5 + $0x9c] ss:$36 sps:$4 sm:$0xff]   ;;  %v3121_v7 = vld [vmem:[#allocation5 + $0x128] ss:$36 sps:$4 sm:$0xff]  }
 0x326   : > { %1577 = vmatprep.subr.bf16.mxu0 %v4382_v27  ;;  %1618 = vmatprep.subr.bf16.mxu1 %v4383_v11  ;;  %v3122_v27 = vld [vmem:[#allocation5 + $0x174] ss:$36 sps:$4 sm:$0xff]  }
 0x327   : > { %v3123_v11 = vld [vmem:[#allocation5 + $0x170] ss:$36 sps:$4 sm:$0xff]  }
 0x329   : > { %1578 = vmatpush1.bf16.msra.mxu0 %v3846_v62  ;;  %1619 = vmatpush1.bf16.msra.mxu1 %v3848_v63  ;;  %v3118_v62 = vld [vmem:[#allocation5 + $0xe4] ss:$36 sps:$4 sm:$0xff]  }
 0x32a   : > { %1579 = vmatprep.subr.bf16.mxu0 %v4384_v30  ;;  %1620 = vmatprep.subr.bf16.mxu1 %v3854_v34  ;;  %v3119_v63 = vld [vmem:[#allocation5 + $0xe0] ss:$36 sps:$4 sm:$0xff]   ;;  %v3120_v34 = vld [vmem:[#allocation5 + $0x12c] ss:$36 sps:$4 sm:$0xff]  }
 0x32b   : > { %v3124_v30 = vld [vmem:[#allocation5 + $0x1bc] ss:$36 sps:$4 sm:$0xff]  }
 0x32d   : > { %1580 = vmatpush1.bf16.msra.mxu0 %v3858_v3  ;;  %1621 = vmatpush1.bf16.msra.mxu1 %v4385_v29  ;;  %v3097_v3 = vld [vmem:[#allocation5 + $0x4c] ss:$36 sps:$4 sm:$0xff]   ;;  %v3125_v29 = vld [vmem:[#allocation5 + $0x1b8] ss:$36 sps:$4 sm:$0xff]  }
 0x32e   : > { %2667 = vmatprep.subr.bf16.mxu0 %v4386_v36  ;;  %1820 = vmatprep.subr.bf16.mxu1 %v3095_v38 }
 0x330   : > { %1598 = vmatmul.mubr.bf16.vlgmr.msra.gmra.mrb[24].mxu0 %v4064_v25  ;;  %1639 = vmatmul.mubr.bf16.vlgmr.msra.gmra.mrb[24].mxu1 %v4064_v25 }
 0x331   : > { %2668 = vmatpush3.bf16.msra.mxu0 %v4388_v37  ;;  %2683 = vmatprep.mubr.msk.bf16.mxu0 %vm3445_vm0, %v4386_v36  ;;  %v3126_v37 = vld [vmem:[#allocation5 + $0x204] ss:$36 sps:$4 sm:$0xff]  }
 0x332   : > { %2669 = vmatprep.subr.bf16.mxu0 %v4386_v36  ;;  %1821 = vmatpush1.bf16.msra.mxu1 %v3096_v39 }
 0x333   : > { %1822 = vmatprep.subr.bf16.mxu1 %v3097_v3  ;;  %1852 = vmatprep.mubr.bf16.mxu1 %v4376_v58 }
 0x335   : > { %2670 = vmatpush3.bf16.msra.mxu0 %v4389_v60  ;;  %v3127_v60 = vld [vmem:[#allocation5 + $0x200] ss:$36 sps:$4 sm:$0xff]  }
 0x336   : > { %2671 = vmatprep.subr.bf16.mxu0 %v4386_v36  ;;  %1823 = vmatpush1.bf16.msra.mxu1 %v3098_v40 }
 0x337   : > { %1824 = vmatprep.subr.bf16.mxu1 %v3099_v41  ;;  %v2543_v41 = vld [vmem:[%s3655_s19 + $0x2c] sm:$0xff] }
 0x339   : > { %2672 = vmatpush3.bf16.msra.mxu0 %v4390_v32  ;;  %v3128_v32 = vld [vmem:[#allocation5 + $0x1c] ss:$36 sps:$4 sm:$0xff]  }
 0x33a   : > { %2673 = vmatprep.subr.bf16.mxu0 %v4386_v36  ;;  %1825 = vmatpush1.bf16.msra.mxu1 %v3100_v42 }
 0x33b   : > { %1826 = vmatprep.subr.bf16.mxu1 %v3101_v43 }
 0x33d   : > { %2674 = vmatpush3.bf16.msra.mxu0 %v4391_v4 }
 0x33e   : > { %2675 = vmatprep.subr.bf16.mxu0 %v4386_v36  ;;  %1827 = vmatpush1.bf16.msra.mxu1 %v3102_v44 }
 0x33f   : > { %1828 = vmatprep.subr.bf16.mxu1 %v3103_v45 }
 0x341   : > { %2676 = vmatpush3.bf16.msra.mxu0 %v4392_v6 }
 0x342   : > { %2677 = vmatprep.subr.bf16.mxu0 %v4386_v36  ;;  %1829 = vmatpush1.bf16.msra.mxu1 %v3104_v46 }
 0x343   : > { %1830 = vmatprep.subr.bf16.mxu1 %v3105_v47 }
 0x345   : > { %2678 = vmatpush3.bf16.msra.mxu0 %v3900_v1  ;;  %v3112_v1 = vld [vmem:[#allocation5 + $0x14] ss:$36 sps:$4 sm:$0xff]  }
 0x346   : > { %2679 = vmatprep.subr.bf16.mxu0 %v4386_v36  ;;  %1831 = vmatpush1.bf16.msra.mxu1 %v3106_v48 }
 0x347   : > { %1832 = vmatprep.subr.bf16.mxu1 %v3107_v49 }
 0x349   : > { %2680 = vmatpush3.bf16.msra.mxu0 %v3906_v61  ;;  %v3117_v61 = vld [vmem:[#allocation5 + $0x98] ss:$36 sps:$4 sm:$0xff]  }
 0x34a   : > { %2681 = vmatprep.subr.bf16.mxu0 %v4386_v36  ;;  %1833 = vmatpush1.bf16.msra.mxu1 %v3108_v50 }
 0x34b   : > { %1834 = vmatprep.subr.bf16.mxu1 %v3109_v51 }
 0x34d   : > { %2682 = vmatpush3.bf16.msra.mxu0 %v4414_v52 }
 0x34e   : > { %1861 = vmatprep.subr.bf16.mxu0 %v3110_v53  ;;  %1835 = vmatpush1.bf16.msra.mxu1 %v3111_v54 }
 0x34f   : > { %1902 = vmatprep.subr.bf16.mxu1 %v3112_v1 }
 0x350   : > { %2684 = vmatmul.mubr.bf16.vlgmr.msra.gmra.mrb[28].mxu0 %v4064_v25 }
 0x351   : > { %1862 = vmatpush1.bf16.msra.mxu0 %v3113_v55  ;;  %1893 = vmatprep.mubr.bf16.mxu0 %v4376_v58 }
 0x352   : > { %1863 = vmatprep.subr.bf16.mxu0 %v3114_v56 }
 0x355   : > { %1864 = vmatpush1.bf16.msra.mxu0 %v3115_v57 }
 0x356   : > { %1865 = vmatprep.subr.bf16.mxu0 %v3116_v59 }
 0x359   : > { %1866 = vmatpush1.bf16.msra.mxu0 %v3117_v61 }
 0x35a   : > { %1867 = vmatprep.subr.bf16.mxu0 %v3118_v62 }
 0x35d   : > { %1868 = vmatpush1.bf16.msra.mxu0 %v3119_v63 }
 0x35e   : > { %1869 = vmatprep.subr.bf16.mxu0 %v3120_v34  ;;  %v2544_v34 = vld [vmem:[%s3655_s19 + $0x34] sm:$0x3] }
 0x361   : > { %1870 = vmatpush1.bf16.msra.mxu0 %v3121_v7 }
 0x362   : > { %1871 = vmatprep.subr.bf16.mxu0 %v3122_v27 }
 0x365   : > { %1872 = vmatpush1.bf16.msra.mxu0 %v3123_v11 }
 0x366   : > { %1873 = vmatprep.subr.bf16.mxu0 %v3124_v30 }
 0x369   : > { %1874 = vmatpush1.bf16.msra.mxu0 %v3125_v29 }
 0x36a   : > { %1875 = vmatprep.subr.bf16.mxu0 %v3126_v37 }
 0x36d   : > { %1876 = vmatpush1.bf16.msra.mxu0 %v3127_v60 }
 0x36e   : > { %1943 = vmatprep.subr.bf16.mxu0 %v3128_v32 }
 0x3e3   : > { %v1517_v4 = vpop.f32.mrb[20].mxu0  ;;  %v1558_v6 = vpop.f32.mrb[20].mxu1 }
 0x3e4   : > { %v1519_v17 = vpop.f32.mrb[21].mxu0  ;;  %v1560_v12 = vpop.f32.mrb[21].mxu1 }
 0x3e5   : > { %v1696_v2 = vcombine.low %v1517_v4, %v1519_v17  ;;  %v1697_v14 = vcombine.low %v1558_v6, %v1560_v12  ;;  %v1521_v20 = vpop.f32.mrb[22].mxu0  ;;  %v1562_v16 = vpop.f32.mrb[22].mxu1 }
 0x3e6   : > { %v1522_v10 = vpop.f32.mrb[23].mxu0  ;;  %v1563_v24 = vpop.f32.mrb[23].mxu1 }
 0x3e7   : > { %v1704_v26 = vrot.slane %v1696_v2, %v3939_v13  ;;  %v1711_v28 = vrot.slane %v1697_v14, %v3939_v13 }
 0x3e9   : > { %v1712_v31 = vcombine.low %v1704_v26, %v1711_v28 }
 0x3eb   : > { %v1740_v35 = vadd.f32 %v2542_v21, %v1712_v31 }
 0x3ed   : > { %v1751_v0 = vrot.slane %v1740_v35, 2  ;;  %v2545_v44 = vmul.f32 -1.442695, %v1740_v35  ;;  %v1759_v51 = vrot.slane %v1740_v35, 4  ;;  %v1764_v55 = vrot.slane %v1740_v35, 6 }
 0x3ef   : > { %v2546_v42 = vmul.f32 -1.442695, %v1751_v0  ;;  %v2547_v62 = vmul.f32 -1.442695, %v1764_v55  ;;  %v3146_v55 = vld [vmem:[#allocation5 + $0x138] ss:$36 sps:$4 sm:$0xff]  }
 0x3f1   : > { %3023 = vpow2.f32 %v2546_v42  ;;  %v3131_v42 = vld [vmem:[#allocation5 + $0x5c] ss:$36 sps:$4 sm:$0xff]  }
 0x3f2   : > { %3025 = vpow2.f32 %v2545_v44  ;;  %v3133_v44 = vld [vmem:[#allocation5 + $0x58] ss:$36 sps:$4 sm:$0xff]  }
 0x3fb   : > { %v3024_v49 = vpop.eup %3023 }
 0x3fc   : > { %v3026_v50 = vpop.eup %3025  ;;  %v1756_v53 = vadd.f32 1.0, %v3024_v49  ;;  %v3138_v49 = vld [vmem:[#allocation5 + $0xa8] ss:$36 sps:$4 sm:$0xff]  }
 0x3fd   : > { %v1746_v1 = vadd.f32 1.0, %v3026_v50  ;;  %v3139_v50 = vld [vmem:[#allocation5 + $0xec] ss:$36 sps:$4 sm:$0xff]  }
 0x403   : > { %v1599_v19 = vpop.f32.mrb[24].mxu0  ;;  %v1640_v23 = vpop.f32.mrb[24].mxu1 }
 0x404   : > { %v1601_v5 = vpop.f32.mrb[25].mxu0  ;;  %v1642_v33 = vpop.f32.mrb[25].mxu1 }
 0x405   : > { %v1713_v15 = vcombine.low %v1599_v19, %v1601_v5  ;;  %v1714_v9 = vcombine.low %v1640_v23, %v1642_v33  ;;  %v1603_v8 = vpop.f32.mrb[26].mxu0  ;;  %v1644_v25 = vpop.f32.mrb[26].mxu1 }
 0x406   : > { %v1604_v38 = vpop.f32.mrb[27].mxu0  ;;  %v1645_v39 = vpop.f32.mrb[27].mxu1 }
 0x407   : > { %v1721_v3 = vrot.slane %v1713_v15, %v3939_v13  ;;  %v1728_v40 = vrot.slane %v1714_v9, %v3939_v13 }
 0x409   : > { %v1729_v43 = vcombine.low %v1721_v3, %v1728_v40  ;;  %v3129_v40 = vld [vmem:[#allocation5 + $0x10] ss:$36 sps:$4 sm:$0xff]  }
 0x40b   : > { %v1741_v45 = vadd.f32 %v2543_v41, %v1729_v43  ;;  %v3130_v41 = vld [vmem:[#allocation5 + $0x18] ss:$36 sps:$4 sm:$0xff]   ;;  %v3132_v43 = vld [vmem:[#allocation5 + $0x64] ss:$36 sps:$4 sm:$0xff]  }
 0x40d   : > { %v2548_v46 = vmul.f32 -1.442695, %v1741_v45  ;;  %v1782_v47 = vrot.slane %v1741_v45, 2  ;;  %v1790_v57 = vrot.slane %v1741_v45, 4  ;;  %v1795_v59 = vrot.slane %v1741_v45, 6 }
 0x40e   : > { %v3134_v45 = vld [vmem:[#allocation5 + $0x60] ss:$36 sps:$4 sm:$0xff]  }
 0x40f   : > { %v2549_v48 = vmul.f32 -1.442695, %v1782_v47  ;;  %3027 = vpow2.f32 %v2548_v46  ;;  %v2550_v63 = vmul.f32 -1.442695, %v1795_v59  ;;  %v3135_v46 = vld [vmem:[#allocation5 + $0xa4] ss:$36 sps:$4 sm:$0xff]  }
 0x410   : > { %v3136_v47 = vld [vmem:[#allocation5 + $0xac] ss:$36 sps:$4 sm:$0xff]   ;;  %v3149_v59 = vld [vmem:[#allocation5 + $0x178] ss:$36 sps:$4 sm:$0xff]  }
 0x411   : > { %3029 = vpow2.f32 %v2549_v48  ;;  %v3137_v48 = vld [vmem:[#allocation5 + $0xa0] ss:$36 sps:$4 sm:$0xff]  }
 0x412   : > { %3031 = vtanh.f32 %v1759_v51  ;;  %v3140_v51 = vld [vmem:[#allocation5 + $0xf4] ss:$36 sps:$4 sm:$0xff]  }
 0x413   : > { %3033 = vrcp.f32 %v1756_v53  ;;  %v3142_v53 = vld [vmem:[#allocation5 + $0xf0] ss:$36 sps:$4 sm:$0xff]  }
 0x414   : > { %3035 = vrcp.f32 %v1746_v1  ;;  %v3145_v1 = vld [vmem:[#allocation5 + $0x130] ss:$36 sps:$4 sm:$0xff]  }
 0x419   : > { %v3028_v52 = vpop.eup %3027 }
 0x41a   : > { %v1777_v61 = vadd.f32 1.0, %v3028_v52  ;;  %v3141_v52 = vld [vmem:[#allocation5 + $0xe8] ss:$36 sps:$4 sm:$0xff]  }
 0x41b   : > { %v3030_v54 = vpop.eup %3029 }
 0x41c   : > { %v1787_v56 = vadd.f32 1.0, %v3030_v54  ;;  %v3032_v60 = vpop.eup %3031  ;;  %v3144_v54 = vld [vmem:[#allocation5 + $0x13c] ss:$36 sps:$4 sm:$0xff]  }
 0x41d   : > { %v3034_v32 = vpop.eup %3033 }
 0x41e   : > { %3037 = vrcp.f32 %v1787_v56  ;;  %v3036_v6 = vpop.eup %3035  ;;  %v1762_v2 = vmul.f32 %v3034_v32, %v3032_v60  ;;  %v3147_v56 = vld [vmem:[#allocation5 + $0x17c] ss:$36 sps:$4 sm:$0xff]   ;;  %v3160_v60 = vld [vmem:[#allocation5 + $0x68] ss:$36 sps:$4 sm:$0xff]   ;;  %v3161_v32 = vld [vmem:[#allocation5 + $0xb0] ss:$36 sps:$4 sm:$0xff]  }
 0x41f   : > { %3039 = vtanh.f32 %v1790_v57  ;;  %v1749_v16 = vmul.f32 %v3036_v6, %v4057_v22  ;;  %v3148_v57 = vld [vmem:[#allocation5 + $0x184] ss:$36 sps:$4 sm:$0xff]  }
 0x420   : > { %3041 = vrcp.f32 %v1777_v61  ;;  %v3150_v61 = vld [vmem:[#allocation5 + $0x180] ss:$36 sps:$4 sm:$0xff]  }
 0x421   : > { %3043 = vpow2.f32 %v2547_v62  ;;  %v4132_v26 = vadd.f32 %v1762_v2, %v1749_v16  ;;  %v3151_v62 = vld [vmem:[#allocation5 + $0x1c4] ss:$36 sps:$4 sm:$0xff]   ;;  %v3166_v2 = vld [vmem:[#allocation5 + $0x218] ss:$36 sps:$4 sm:$0xff]  }
 0x422   : > { %3045 = vpow2.f32 %v2550_v63  ;;  %v3152_v63 = vld [vmem:[#allocation5 + $0x1cc] ss:$36 sps:$4 sm:$0xff]   ;;  %v3163_v6 = vld [vmem:[#allocation5 + $0x140] ss:$36 sps:$4 sm:$0xff]  }
 0x423   : > { %v1681_v7 = vpop.f32.mrb[28].mxu0 }
 0x424   : > { %v1736_v27 = vrot.slane %v1681_v7, %v3939_v13  ;;  %v2685_v11 = vpop.f32.mrb[29].mxu0  ;;  %v3154_v7 = vld [vmem:[#allocation5 + $0x1c8] ss:$36 sps:$4 sm:$0xff]  }
 0x425   : > { %v1684_v30 = vpop.f32.mrb[30].mxu0  ;;  %v3156_v11 = vld [vmem:[#allocation5 + $0x214] ss:$36 sps:$4 sm:$0xff]  }
 0x426   : > { %v1742_v29 = vadd.f32 %v2544_v34, %v1736_v27  ;;  %v2686_v37 = vpop.f32.mrb[31].mxu0  ;;  %v3153_v34 = vld [vmem:[#allocation5 + $0x1c0] ss:$36 sps:$4 sm:$0xff]   ;;  %v3155_v27 = vld [vmem:[#allocation5 + $0x20c] ss:$36 sps:$4 sm:$0xff]  }
 0x427   : > { %v3157_v30 = vld [vmem:[#allocation5 + $0x208] ss:$36 sps:$4 sm:$0xff]   ;;  %v3159_v37 = vld [vmem:[#allocation5 + $0x20] ss:$36 sps:$4 sm:$0xff]  }
 0x428   : > { %v2551_v4 = vmul.f32 -1.442695, %v1742_v29  ;;  %v3038_v17 = vpop.eup %3037  ;;  %v3158_v29 = vld [vmem:[#allocation5 + $0x210] ss:$36 sps:$4 sm:$0xff]  }
 0x429   : > { %v3040_v12 = vpop.eup %3039 }
 0x42a   : > { %3047 = vpow2.f32 %v2551_v4  ;;  %v3042_v14 = vpop.eup %3041  ;;  %v1793_v10 = vmul.f32 %v3040_v12, %v3038_v17  ;;  %v3162_v4 = vld [vmem:[#allocation5 + $0xf8] ss:$36 sps:$4 sm:$0xff]   ;;  %v3164_v17 = vld [vmem:[#allocation5 + $0x188] ss:$36 sps:$4 sm:$0xff]   ;;  %v3165_v12 = vld [vmem:[#allocation5 + $0x1d0] ss:$36 sps:$4 sm:$0xff]  }
 0x42b   : > { %v3044_v20 = vpop.eup %3043  ;;  %v1780_v28 = vmul.f32 %v3042_v14, %v4060_v18  ;;  %3049 = vtanh.f32 %v4132_v26 }
 0x42c   : > { %v3046_v24 = vpop.eup %3045  ;;  %v1769_v31 = vadd.f32 1.0, %v3044_v20 }
 0x42d   : > { %v4135_v21 = vadd.f32 %v1793_v10, %v1780_v28  ;;  %v1800_v35 = vadd.f32 1.0, %v3046_v24 }
 0x42e   : > { %3051 = vrcp.f32 %v1769_v31 }
 0x42f   : > { %3053 = vtanh.f32 %v4135_v21 }
 0x430   : > { %3055 = vrcp.f32 %v1800_v35 }
 0x434   : > { %v3048_v19 = vpop.eup %3047 }
 0x435   : > { %v1808_v23 = vadd.f32 1.0, %v3048_v19  ;;  %v3050_v22 = vpop.eup %3049 }
 0x437   : > { %3057 = vrcp.f32 %v1808_v23 }
 0x438   : > { %v3052_v5 = vpop.eup %3051 }
 0x439   : > { %v3054_v33 = vpop.eup %3053  ;;  %v1773_v15 = vmul.f32 %v3052_v5, %v3050_v22 }
 0x43a   : > { %v3056_v0 = vpop.eup %3055 }
 0x43b   : > { %v1804_v18 = vmul.f32 %v3056_v0, %v3054_v33 }
 0x441   : > { %v3058_v9 = vpop.eup %3057 }
 0x442   : > { %v1811_v8 = vmul.f32 %v3058_v9, %v1773_v15  ;;  %v1812_v25 = vsub.f32 1.0, %v3058_v9 }
 0x444   : > { %v1813_v38 = vmul.f32 %v1812_v25, %v1804_v18 }
 0x446   : > { %v1814_v39 = vadd.f32 %v1813_v38, %v1811_v8 }
 0x448   : > { %v4139_v3 = vpack.c.bf16 %v1814_v39, %v1814_v39 }
 0x44a   : > { %1853 = vmatmul.mubr.bf16.vlgmr.msra.gmra.mrb[28].mxu1 %v4139_v3  ;;  %1894 = vmatmul.mubr.bf16.vlgmr.msra.gmra.mrb[32].mxu0 %v4139_v3 }
 0x44b   : > { %1903 = vmatpush1.bf16.msra.mxu1 %v3129_v40  ;;  %1944 = vmatpush1.bf16.msra.mxu0 %v3130_v41 }
 0x44c   : > { %1904 = vmatprep.subr.bf16.mxu1 %v3131_v42  ;;  %1945 = vmatprep.subr.bf16.mxu0 %v3132_v43 }
 0x44d   : > { %1934 = vmatprep.mubr.bf16.mxu1 %v4376_v58  ;;  %1975 = vmatprep.mubr.bf16.mxu0 %v4376_v58  ;;  %v3143_v58 = vld [vmem:[#allocation5 + $0x134] ss:$36 sps:$4 sm:$0xff]  }
 0x44f   : > { %1905 = vmatpush1.bf16.msra.mxu1 %v3133_v44  ;;  %1946 = vmatpush1.bf16.msra.mxu0 %v3134_v45 }
 0x450   : > { %1906 = vmatprep.subr.bf16.mxu1 %v3135_v46  ;;  %1947 = vmatprep.subr.bf16.mxu0 %v3136_v47 }
 0x453   : > { %1907 = vmatpush1.bf16.msra.mxu1 %v3137_v48  ;;  %1948 = vmatpush1.bf16.msra.mxu0 %v3138_v49 }
 0x454   : > { %1908 = vmatprep.subr.bf16.mxu1 %v3139_v50  ;;  %1949 = vmatprep.subr.bf16.mxu0 %v3140_v51 }
 0x457   : > { %1909 = vmatpush1.bf16.msra.mxu1 %v3141_v52  ;;  %1950 = vmatpush1.bf16.msra.mxu0 %v3142_v53 }
 0x458   : > { %1910 = vmatprep.subr.bf16.mxu1 %v3143_v58  ;;  %1951 = vmatprep.subr.bf16.mxu0 %v3144_v54  ;;  %v2553_v54 = vld [vmem:[%s3655_s19 + $0x3e] sm:$0xff] }
 0x45b   : > { %1911 = vmatpush1.bf16.msra.mxu1 %v3145_v1  ;;  %1952 = vmatpush1.bf16.msra.mxu0 %v3146_v55 }
 0x45c   : > { %1912 = vmatprep.subr.bf16.mxu1 %v3147_v56  ;;  %1953 = vmatprep.subr.bf16.mxu0 %v3148_v57 }
 0x45f   : > { %1913 = vmatpush1.bf16.msra.mxu1 %v3149_v59  ;;  %1954 = vmatpush1.bf16.msra.mxu0 %v3150_v61 }
 0x460   : > { %1914 = vmatprep.subr.bf16.mxu1 %v3151_v62  ;;  %1955 = vmatprep.subr.bf16.mxu0 %v3152_v63 }
 0x463   : > { %1915 = vmatpush1.bf16.msra.mxu1 %v3153_v34  ;;  %1956 = vmatpush1.bf16.msra.mxu0 %v3154_v7 }
 0x464   : > { %1916 = vmatprep.subr.bf16.mxu1 %v3155_v27  ;;  %1957 = vmatprep.subr.bf16.mxu0 %v3156_v11 }
 0x467   : > { %1917 = vmatpush1.bf16.msra.mxu1 %v3157_v30  ;;  %1958 = vmatpush1.bf16.msra.mxu0 %v3158_v29 }
 0x468   : > { %2687 = vmatprep.subr.bf16.mxu1 %v4386_v36 }
 0x46a   : > { %1935 = vmatmul.mubr.bf16.vlgmr.msra.gmra.mrb[32].mxu1 %v4139_v3  ;;  %1976 = vmatmul.mubr.bf16.vlgmr.msra.gmra.mrb[36].mxu0 %v4139_v3 }
 0x46b   : > { %2688 = vmatpush3.bf16.msra.mxu1 %v3159_v37  ;;  %2703 = vmatprep.mubr.msk.bf16.mxu1 %vm3445_vm0, %v4386_v36 }
 0x46c   : > { %2689 = vmatprep.subr.bf16.mxu1 %v4386_v36 }
 0x46f   : > { %2690 = vmatpush3.bf16.msra.mxu1 %v3160_v60 }
 0x470   : > { %2691 = vmatprep.subr.bf16.mxu1 %v4386_v36 }
 0x473   : > { %2692 = vmatpush3.bf16.msra.mxu1 %v3161_v32  ;;  %v2554_v32 = vld [vmem:[%s3655_s19 + $0x46] sm:$0x3] }
 0x474   : > { %2693 = vmatprep.subr.bf16.mxu1 %v4386_v36 }
 0x477   : > { %2694 = vmatpush3.bf16.msra.mxu1 %v3162_v4 }
 0x478   : > { %2695 = vmatprep.subr.bf16.mxu1 %v4386_v36 }
 0x47b   : > { %2696 = vmatpush3.bf16.msra.mxu1 %v3163_v6 }
 0x47c   : > { %2697 = vmatprep.subr.bf16.mxu1 %v4386_v36 }
 0x47f   : > { %2698 = vmatpush3.bf16.msra.mxu1 %v3164_v17 }
 0x480   : > { %2699 = vmatprep.subr.bf16.mxu1 %v4386_v36 }
 0x483   : > { %2700 = vmatpush3.bf16.msra.mxu1 %v3165_v12 }
 0x484   : > { %2701 = vmatprep.subr.bf16.mxu1 %v4386_v36  ;;  %v2552_v36 = vld [vmem:[%s3655_s19 + $0x36] sm:$0xff] }
 0x487   : > { %2702 = vmatpush3.bf16.msra.mxu1 %v3166_v2 }
 0x48a   : > { %2704 = vmatmul.mubr.bf16.vlgmr.msra.gmra.mrb[36].mxu1 %v4139_v3 }
 0x51d   : > { %v1854_v14 = vpop.f32.mrb[28].mxu1  ;;  %v1895_v20 = vpop.f32.mrb[32].mxu0 }
 0x51e   : > { %v1856_v16 = vpop.f32.mrb[29].mxu1  ;;  %v1897_v10 = vpop.f32.mrb[33].mxu0 }
 0x51f   : > { %v2033_v24 = vcombine.low %v1854_v14, %v1856_v16  ;;  %v2034_v28 = vcombine.low %v1895_v20, %v1897_v10  ;;  %v1858_v31 = vpop.f32.mrb[30].mxu1  ;;  %v1899_v35 = vpop.f32.mrb[34].mxu0 }
 0x520   : > { %v1859_v19 = vpop.f32.mrb[31].mxu1  ;;  %v1900_v23 = vpop.f32.mrb[35].mxu0 }
 0x521   : > { %v2041_v22 = vrot.slane %v2033_v24, %v3939_v13  ;;  %v2048_v5 = vrot.slane %v2034_v28, %v3939_v13 }
 0x523   : > { %v2049_v33 = vcombine.low %v2041_v22, %v2048_v5 }
 0x525   : > { %v2077_v0 = vadd.f32 %v2552_v36, %v2049_v33 }
 0x527   : > { %v2555_v15 = vmul.f32 -1.442695, %v2077_v0  ;;  %v2088_v9 = vrot.slane %v2077_v0, 2  ;;  %v2096_v25 = vrot.slane %v2077_v0, 4  ;;  %v2101_v30 = vrot.slane %v2077_v0, 6 }
 0x529   : > { %3059 = vpow2.f32 %v2555_v15  ;;  %v2556_v18 = vmul.f32 -1.442695, %v2088_v9  ;;  %v2557_v37 = vmul.f32 -1.442695, %v2101_v30 }
 0x52b   : > { %3061 = vpow2.f32 %v2556_v18 }
 0x533   : > { %v3060_v8 = vpop.eup %3059 }
 0x534   : > { %v2083_v38 = vadd.f32 1.0, %v3060_v8 }
 0x535   : > { %v3062_v39 = vpop.eup %3061 }
 0x536   : > { %3063 = vrcp.f32 %v2083_v38  ;;  %v2093_v3 = vadd.f32 1.0, %v3062_v39 }
 0x537   : > { %3065 = vtanh.f32 %v2096_v25 }
 0x538   : > { %3067 = vrcp.f32 %v2093_v3 }
 0x53d   : > { %v1936_v40 = vpop.f32.mrb[32].mxu1  ;;  %v1977_v41 = vpop.f32.mrb[36].mxu0 }
 0x53e   : > { %v1938_v42 = vpop.f32.mrb[33].mxu1  ;;  %v1979_v43 = vpop.f32.mrb[37].mxu0 }
 0x53f   : > { %v2050_v44 = vcombine.low %v1936_v40, %v1938_v42  ;;  %v2051_v45 = vcombine.low %v1977_v41, %v1979_v43  ;;  %v1940_v46 = vpop.f32.mrb[34].mxu1  ;;  %v1981_v47 = vpop.f32.mrb[38].mxu0  ;;  %v3167_v40 = vld [vmem:[#allocation7] sm:$0xff] (!%p2562_p9)   ;;  %v3447_v41 = vmov (!%p2562_p9), 0.0   ;;  %v3168_v42 = vld [vmem:[#allocation7 + $0x8] sm:$0xff] (!%p2562_p9)   ;;  %v3169_v43 = vld [vmem:[#allocation7 + $0x10] sm:$0xff] (!%p2562_p9)  }
 0x540   : > { %v3064_v48 = vpop.eup %3063  ;;  %v1941_v49 = vpop.f32.mrb[35].mxu1  ;;  %2707 = vmatprep.subr.bf16.mxu0 (!%p2562_p9), %v3447_v41  ;;  %2723 = vmatprep.mubr.msk.bf16.mxu0 (!%p2562_p9), %vm3448_vm1, %v3447_v41  ;;  %v3172_v46 = vld [vmem:[#allocation7 + $0x28] sm:$0xff] (!%p2562_p9)   ;;  %v3173_v47 = vld [vmem:[#allocation7 + $0x30] sm:$0xff] (!%p2562_p9)  }
 0x541   : > { %v1982_v50 = vpop.f32.mrb[39].mxu0  ;;  %v3066_v51 = vpop.eup %3065  ;;  %v2058_v52 = vrot.slane %v2050_v44, %v3939_v13  ;;  %v2065_v53 = vrot.slane %v2051_v45, %v3939_v13  ;;  %v2086_v1 = vmul.f32 %v3064_v48, %v4132_v26  ;;  %2708 = vmatpush3.bf16.msra.mxu0 (!%p2562_p9), %v3167_v40  ;;  %v3170_v44 = vld [vmem:[#allocation7 + $0x18] sm:$0xff] (!%p2562_p9)   ;;  %v3171_v45 = vld [vmem:[#allocation7 + $0x20] sm:$0xff] (!%p2562_p9)  }
 0x542   : > { %v3068_v58 = vpop.eup %3067  ;;  %2709 = vmatprep.subr.bf16.mxu0 (!%p2562_p9), %v3447_v41  ;;  %v3174_v48 = vld [vmem:[#allocation7 + $0x38] sm:$0xff] (!%p2562_p9)   ;;  %v2563_v50 = vld [vmem:[%s4283_s3] ss:$0 sm:$0xff] (!%p2562_p9) }
 0x543   : > { %v2099_v55 = vmul.f32 %v3068_v58, %v3066_v51  ;;  %v2066_v56 = vcombine.low %v2058_v52, %v2065_v53 }
 0x545   : > { %v2100_v57 = vadd.f32 %v2099_v55, %v2086_v1  ;;  %v2078_v59 = vadd.f32 %v2553_v54, %v2066_v56  ;;  %2710 = vmatpush3.bf16.msra.mxu0 (!%p2562_p9), %v3168_v42 }
 0x546   : > { %2711 = vmatprep.subr.bf16.mxu0 (!%p2562_p9), %v3447_v41 }
 0x547   : > { %2153 = vst [vmem:[#allocation8] sm:$0x3] %v2100_v57  ;;  %v2558_v61 = vmul.f32 -1.442695, %v2078_v59  ;;  %v2119_v62 = vrot.slane %v2078_v59, 2  ;;  %v2127_v7 = vrot.slane %v2078_v59, 4 }
 0x548   : > { %v2132_v26 = vrot.slane %v2078_v59, 6 }
 0x549   : > { %3069 = vpow2.f32 %v2558_v61  ;;  %v2559_v63 = vmul.f32 -1.442695, %v2119_v62  ;;  %2712 = vmatpush3.bf16.msra.mxu0 (!%p2562_p9), %v3169_v43 }
 0x54a   : > { %v2560_v60 = vmul.f32 -1.442695, %v2132_v26  ;;  %2713 = vmatprep.subr.bf16.mxu0 (!%p2562_p9), %v3447_v41 }
 0x54b   : > { %3071 = vpow2.f32 %v2559_v63 }
 0x54d   : > { %2714 = vmatpush3.bf16.msra.mxu0 (!%p2562_p9), %v3170_v44 }
 0x54e   : > { %2715 = vmatprep.subr.bf16.mxu0 (!%p2562_p9), %v3447_v41 }
 0x551   : > { %2716 = vmatpush3.bf16.msra.mxu0 (!%p2562_p9), %v3171_v45 }
 0x552   : > { %2717 = vmatprep.subr.bf16.mxu0 (!%p2562_p9), %v3447_v41 }
 0x553   : > { %v3070_v34 = vpop.eup %3069 }
 0x554   : > { %v2114_v27 = vadd.f32 1.0, %v3070_v34 }
 0x555   : > { %v3072_v11 = vpop.eup %3071  ;;  %2718 = vmatpush3.bf16.msra.mxu0 (!%p2562_p9), %v3172_v46 }
 0x556   : > { %3073 = vrcp.f32 %v2114_v27  ;;  %v2124_v29 = vadd.f32 1.0, %v3072_v11  ;;  %2719 = vmatprep.subr.bf16.mxu0 (!%p2562_p9), %v3447_v41 }
 0x557   : > { %3075 = vtanh.f32 %v2127_v7 }
 0x558   : > { %3077 = vrcp.f32 %v2124_v29 }
 0x559   : > { %3079 = vpow2.f32 %v2557_v37  ;;  %2720 = vmatpush3.bf16.msra.mxu0 (!%p2562_p9), %v3173_v47 }
 0x55a   : > { %3081 = vpow2.f32 %v2560_v60  ;;  %2721 = vmatprep.subr.bf16.mxu0 (!%p2562_p9), %v3447_v41 }
 0x55d   : > { %v2018_v4 = vpop.f32.mrb[36].mxu1  ;;  %2722 = vmatpush3.bf16.msra.mxu0 (!%p2562_p9), %v3174_v48 }
 0x55e   : > { %v2073_v6 = vrot.slane %v2018_v4, %v3939_v13  ;;  %v2705_v17 = vpop.f32.mrb[37].mxu1 }
 0x55f   : > { %v2021_v12 = vpop.f32.mrb[38].mxu1 }
 0x560   : > { %v3074_v2 = vpop.eup %3073  ;;  %v2079_v14 = vadd.f32 %v2554_v32, %v2073_v6  ;;  %v2706_v20 = vpop.f32.mrb[39].mxu1 }
 0x561   : > { %v3076_v16 = vpop.eup %3075  ;;  %v2117_v28 = vmul.f32 %v3074_v2, %v4135_v21 }
 0x562   : > { %v3078_v10 = vpop.eup %3077  ;;  %v2561_v24 = vmul.f32 -1.442695, %v2079_v14 }
 0x563   : > { %v2130_v31 = vmul.f32 %v3078_v10, %v3076_v16  ;;  %v3080_v19 = vpop.eup %3079 }
 0x564   : > { %3083 = vpow2.f32 %v2561_v24  ;;  %v3082_v23 = vpop.eup %3081  ;;  %v2106_v22 = vadd.f32 1.0, %v3080_v19 }
 0x565   : > { %v2131_v35 = vadd.f32 %v2130_v31, %v2117_v28  ;;  %v2137_v5 = vadd.f32 1.0, %v3082_v23  ;;  %3085 = vtanh.f32 %v2100_v57 }
 0x566   : > { %3087 = vrcp.f32 %v2106_v22 }
 0x567   : > { %2154 = vst [vmem:[#allocation9] sm:$0x3] %v2131_v35  ;;  %3089 = vtanh.f32 %v2131_v35 }
 0x568   : > { %3091 = vrcp.f32 %v2137_v5 }
 0x56e   : > { %v3084_v13 = vpop.eup %3083 }
 0x56f   : > { %v2145_v36 = vadd.f32 1.0, %v3084_v13  ;;  %v3086_v33 = vpop.eup %3085 }
 0x570   : > { %v3088_v0 = vpop.eup %3087 }
 0x571   : > { %3093 = vrcp.f32 %v2145_v36  ;;  %v3090_v15 = vpop.eup %3089  ;;  %v2110_v21 = vmul.f32 %v3088_v0, %v3086_v33 }
 0x572   : > { %v3092_v9 = vpop.eup %3091 }
 0x573   : > { %v2141_v8 = vmul.f32 %v3092_v9, %v3090_v15 }
 0x57b   : > { %v3094_v18 = vpop.eup %3093 }
 0x57c   : > { %v2148_v25 = vmul.f32 %v3094_v18, %v2110_v21  ;;  %v2149_v38 = vsub.f32 1.0, %v3094_v18  ;;  %2158 = sbr.rel (%p2562_p9) target bundleno = 1627 (0x65b), region = 56 }
 0x57e   : > { %v2150_v39 = vmul.f32 %v2149_v38, %v2141_v8 }
 0x580   : > { %v2151_v3 = vadd.f32 %v2150_v39, %v2148_v25 }
 0x582   : > { %2152 = vst [vmem:[#allocation11] sm:$0x3] %v2151_v3  ;;  %v2159_v49 = vpack.c.bf16 (!%p2562_p9), %v2151_v3, %v2151_v3 }
 0x584   : > { %2724 = vmatmul.mubr.bf16.vlgmr.msra.gmra.mrb[0].mxu0 %v2159_v49 }
 0x657   : > { %v2265_v51 = vpop.f32.mrb[0].mxu0 }
 0x658   : > { %v2266_v52 = vadd.f32 %v2563_v50, %v2265_v51  ;;  %v2725_v53 = vpop.f32.mrb[1].mxu0 }
 0x659   : > { %v2268_v58 = vpop.f32.mrb[2].mxu0 }
 0x65a   : > { %2271 = vst [vmem:[#allocation12] sm:$0x3] %v2266_v52  ;;  %v2726_v54 = vpop.f32.mrb[3].mxu0 }
 0x65b PF: > { %s4415_s9 = sadd.s32 4294967295, %s3431_s29   ;;  %s3449_s22 = smov [#allocation9]  }
 0x65c   : > { %p4174_p8 = scmp.eq.s32.totalorder %s4415_s9, 1  ;;  %s2294_s24 = sshll.u32 %s3449_s22, 4  ;;  %s2295_s24 = int_to_ptr.vmem [resolvable:$true] %s2294_s24 }
 0x65d   : > { %s3261_s14 = scalar_lea.vmem %s2295_s24, 32  ;;  %p3268_p10 = scmp.lt.s32.totalorder %s2295_s24, %s2295_s24 }
 0x65e   : > { %p3262_p1 = scmp.ne.s32.totalorder %s2295_s24, %s3261_s14  ;;  %p3269_p7 = scmp.lt.s32.totalorder %s3261_s14, %s3261_s14 }
 0x660   : > { %p3263_p4 = pnand %p3262_p1, %p4174_p8  ;;  %p3270_p13 = por %p3269_p7, %p3268_p10 }
 0x662   : > { %p3264_p5 = pneg %p3263_p4 }
 0x664   : > { %p3271_p2 = pnand %p3270_p13, %p3264_p5 }
 0x666   : > { %3274 = shalt.err (!%p3271_p2)
}
 0x667   : > { %s3275_s11 = scalar_lea.hbm %s4285_s5, 32 }
 0x668   : > { %p3276_p3 = scmp.ne.s32.totalorder %s4285_s5, %s3275_s11  ;;  %p3281_p6 = scmp.lt.u32.totalorder %s3275_s11, %s4285_s5 }
 0x66a   : > { %p3277_p12 = pnand %p3276_p3, %p4174_p8 }
 0x66c   : > { %p3278_p0 = pneg %p3277_p12 }
 0x66e   : > { %p3283_p11 = pnand %p3281_p6, %p3278_p0 }
 0x670   : > { %3286 = shalt.err (!%p3283_p11)
}
 0x671   : > { %2743 = dma.vmem_to_hbm [thread:$0]  (%p4174_p8), %s2295_s24, 32, %s4285_s5, [#allocation10]  }
 0x672   : > { %s3450_s19 = smov [#allocation8]   ;;  %s3451_s8 = smov [#allocation11]  }
 0x673   : > { %s2281_s27 = sshll.u32 %s3450_s19, 4  ;;  %s2307_s9 = sshll.u32 %s3451_s8, 4  ;;  %s2282_s27 = int_to_ptr.vmem [resolvable:$true] %s2281_s27  ;;  %s2308_s9 = int_to_ptr.vmem [resolvable:$true] %s2307_s9 }
 0x674   : > { %s3287_s22 = scalar_lea.vmem %s2282_s27, 32  ;;  %p3294_p5 = scmp.lt.s32.totalorder %s2282_s27, %s2282_s27 }
 0x675   : > { %p3288_p9 = scmp.ne.s32.totalorder %s2282_s27, %s3287_s22  ;;  %p3295_p10 = scmp.lt.s32.totalorder %s3287_s22, %s3287_s22 }
 0x677   : > { %p3289_p1 = pnand %p3288_p9, %p4174_p8  ;;  %p3296_p7 = por %p3295_p10, %p3294_p5 }
 0x679   : > { %p3290_p4 = pneg %p3289_p1 }
 0x67b   : > { %p3297_p13 = pnand %p3296_p7, %p3290_p4 }
 0x67d   : > { %3300 = shalt.err (!%p3297_p13)
}
 0x67e   : > { %s3301_s24 = scalar_lea.hbm %s4284_s4, 32 }
 0x67f   : > { %p3302_p2 = scmp.ne.s32.totalorder %s4284_s4, %s3301_s24  ;;  %p3307_p0 = scmp.lt.u32.totalorder %s3301_s24, %s4284_s4 }
 0x681   : > { %p3303_p3 = pnand %p3302_p2, %p4174_p8 }
 0x683   : > { %p3304_p12 = pneg %p3303_p3 }
 0x685   : > { %p3309_p6 = pnand %p3307_p0, %p3304_p12 }
 0x687   : > { %3312 = shalt.err (!%p3309_p6)
}
 0x688   : > { %2741 = dma.vmem_to_hbm [thread:$0]  (%p4174_p8), %s2282_s27, 32, %s4284_s4, [#allocation4]  }
 0x689   : > { %s3313_s23 = scalar_lea.vmem %s2308_s9, 32  ;;  %p3320_p4 = scmp.lt.s32.totalorder %s2308_s9, %s2308_s9 }
 0x68a   : > { %p3314_p11 = scmp.ne.s32.totalorder %s2308_s9, %s3313_s23  ;;  %p3321_p5 = scmp.lt.s32.totalorder %s3313_s23, %s3313_s23 }
 0x68c   : > { %p3315_p9 = pnand %p3314_p11, %p4174_p8  ;;  %p3322_p10 = por %p3321_p5, %p3320_p4 }
 0x68e   : > { %p3316_p1 = pneg %p3315_p9 }
 0x690   : > { %p3323_p7 = pnand %p3322_p10, %p3316_p1 }
 0x692   : > { %3326 = shalt.err (!%p3323_p7)
}
 0x693   : > { %s3327_s8 = scalar_lea.hbm %s4286_s6, 32 }
 0x694   : > { %p3328_p13 = scmp.ne.s32.totalorder %s4286_s6, %s3327_s8  ;;  %p3333_p12 = scmp.lt.u32.totalorder %s3327_s8, %s4286_s6 }
 0x696   : > { %p3329_p2 = pnand %p3328_p13, %p4174_p8 }
 0x698   : > { %p3330_p3 = pneg %p3329_p2 }
 0x69a   : > { %p3335_p0 = pnand %p3333_p12, %p3330_p3 }
 0x69c   : > { %3338 = shalt.err (!%p3335_p0)
}
 0x69d   : > { %2745 = dma.vmem_to_hbm [thread:$0]  (%p4174_p8), %s2308_s9, 32, %s4286_s6, [#allocation10]  }
 0x69e   : > { %s3452_s11 = smov [#allocation12]  }
 0x69f   : > { %s2320_s30 = sshll.u32 %s3452_s11, 4  ;;  %s2321_s30 = int_to_ptr.vmem [resolvable:$true] %s2320_s30 }
 0x6a0   : > { %s3339_s20 = scalar_lea.vmem %s2321_s30, 32  ;;  %p3346_p1 = scmp.lt.s32.totalorder %s2321_s30, %s2321_s30 }
 0x6a1   : > { %p3340_p6 = scmp.ne.s32.totalorder %s2321_s30, %s3339_s20  ;;  %p3347_p4 = scmp.lt.s32.totalorder %s3339_s20, %s3339_s20 }
 0x6a3   : > { %p3341_p11 = pnand %p3340_p6, %p4174_p8  ;;  %p3348_p5 = por %p3347_p4, %p3346_p1 }
 0x6a5   : > { %p3342_p9 = pneg %p3341_p11 }
 0x6a7   : > { %p3349_p10 = pnand %p3348_p5, %p3342_p9 }
 0x6a9   : > { %3352 = shalt.err (!%p3349_p10)
}
 0x6aa   : > { %s3353_s23 = scalar_lea.hbm %s4287_s7, 32 }
 0x6ab   : > { %p3354_p7 = scmp.ne.s32.totalorder %s4287_s7, %s3353_s23  ;;  %p3359_p3 = scmp.lt.u32.totalorder %s3353_s23, %s4287_s7 }
 0x6ad   : > { %p3355_p13 = pnand %p3354_p7, %p4174_p8 }
 0x6af   : > { %p3356_p2 = pneg %p3355_p13 }
 0x6b1   : > { %p3361_p12 = pnand %p3359_p3, %p3356_p2 }
 0x6b3   : > { %3364 = shalt.err (!%p3361_p12)
}
 0x6b4   : > { %2747 = dma.vmem_to_hbm [thread:$0]  (%p4174_p8), %s2321_s30, 32, %s4287_s7, [#allocation13]  }
 0x6b5   : > { %3398 = dma.done.wait (%p4174_p8), [#allocation4], 32  }
 0x6b6   : > { %3400 = vsyncadd (%p4174_p8), [#allocation4], 4294967264 }
 0x6b7   : > { %3402 = dma.done.wait (%p4174_p8), [#allocation10], 64  }
 0x6b8   : > { %3404 = vsyncadd (%p4174_p8), [#allocation10], 4294967232 }
 0x6b9   : > { %3406 = dma.done.wait (%p4174_p8), [#allocation13], 32  }
 0x6ba   : > { %3408 = vsyncadd (%p4174_p8), [#allocation13], 4294967264 }
 0x6bb PF: > { %s25_s29 = sadd.s32 1, %s3431_s29   ;;  %s4417_s24 = smov %s3415_s25 }
 0x6bc   : > { %p22_p0 = scmp.ge.s32.totalorder %s25_s29, 4   ;;  %s4418_s25 = smov %s3419_s26 }
 0x6bd   : > { %s4419_s26 = smov %s3615_s15  ;;  %s4420_s27 = smov %s3427_s28 }
 0x6be   : > { %s4421_s28 = smov %s4423_s17  ;;  %24 = sbr.rel (!%p22_p0) target bundleno = 8 (0x8), region = 120 }
 0x6c5   :  { %2345 = vsyncpa [#allocation3], 1 }
 0x6c6   :  { %2347 = vsyncpa [#allocation3 + $0x1], 1 }
 0x6c7   :  { %2348 = vsyncpa [#allocation6], 1 }
 0x6c8   :  { %2349 = vsyncpa [#allocation4], 1 }
 0x6c9   :  { %2351 = vsyncpa [#allocation4 + $0x1], 1 }
 0x6ca   :  { %2352 = vsyncpa [#allocation10], 1 }
 0x6cb   :  { %2353 = vsyncpa [#allocation13], 1 }

</bundles_post_ra>
